<compile_context>
chip_gen: v7x
topology: tpu7x:2x2x1
jax: 0.10.0
libtpu: 0.0.40
codegen_flags: <defaults>
</compile_context>

<pallas_src>
import functools

import jax
import jax.numpy as jnp
import numpy as np
from jax import lax
from jax.experimental import pallas as pl
from jax.experimental.pallas import tpu as pltpu


def _round_up(x, m):
    return ((x + m - 1) // m) * m


def _vtm_kernel(x_ref, w_ref, b_ref, o_ref, xsum_ref, *, reduction_factor,
                embed_dim, dot_precision):
    # x_ref   : (TM, r*C)  lane-contiguous rows (one merged-token group / row)
    # w_ref   : (C, TN)    weight tile, pre-scaled by 1/r, compute dtype
    # b_ref   : (1, TN)    bias tile, f32
    # o_ref   : (TM, TN)
    # xsum_ref: (TM, C)    per-row-tile token sum (compute dtype), computed
    #                      once and reused across all column tiles.
    r, C = reduction_factor, embed_dim

    @pl.when(pl.program_id(1) == 0)
    def _():
        # Sum of r static lane slices -> pure VPU adds, f32 accumulation.
        acc = x_ref[:, 0:C].astype(jnp.float32)
        for j in range(1, r):                       # r is a Python constant
            acc = acc + x_ref[:, j * C:(j + 1) * C].astype(jnp.float32)
        xsum_ref[...] = acc.astype(xsum_ref.dtype)

    # Projection on the MXU (f32 accumulation); the 1/r mean is folded into w.
    y = jnp.dot(xsum_ref[...], w_ref[...],
                preferred_element_type=jnp.float32,
                precision=dot_precision)
    y = y + b_ref[...]                              # bias broadcast (f32)
    o_ref[...] = y.astype(o_ref.dtype)


def visual_token_merging(x, weight, bias, reduction_factor=2, *,
                         row_tile=None, col_tile=None, use_bf16_matmul=True):
    """x: (B, N, C); weight: (C, C//r) in (in_features, out_features) layout
    (i.e. the transpose of PyTorch nn.Linear's stored weight); bias: (C//r,).

    Returns (B, N//r, C//r) in x.dtype, matching
    nn.Linear(C, C//r)(x.view(B, N//r, r, C).mean(dim=2)).
    """
    B, N, C = x.shape
    r = reduction_factor
    assert N % r == 0 and C % r == 0
    Nm, Cout = N // r, C // r
    assert weight.shape == (C, Cout) and bias.shape == (Cout,)
    # Lane-aligned slices keep the r-sum on free VPU adds and the output
    # stores lane-dense; a non-128-multiple C would silently regress 3-5x.
    assert C % 128 == 0, "embed_dim must be a multiple of 128 for this kernel"

    rows = B * Nm
    x2 = x.reshape(rows, r * C)          # free reshape; no pad, no copy

    compute_dtype = jnp.bfloat16 if use_bf16_matmul else jnp.float32
    if use_bf16_matmul:
        dot_precision = lax.Precision.DEFAULT
    else:
        # HIGHEST costs ~6x MXU passes; on v5e that flips the kernel from
        # HBM-bound to MXU-bound for C >~ 512, so use HIGH (3x) there.
        dot_precision = (lax.Precision.HIGHEST if C < 512
                         else lax.Precision.HIGH)

    # Fold the 1/r mean scale into the weight once, outside the kernel.
    w = (weight.astype(jnp.float32) * (1.0 / r)).astype(compute_dtype)
    b2 = bias.astype(jnp.float32).reshape(1, Cout)

    # ---- generation-aware VMEM budget -------------------------------------
    try:
        vmem_cap = int(pltpu.get_tpu_info().vmem_capacity_bytes * 0.85)
    except Exception:
        vmem_cap = 64 << 20              # conservative fallback
    headroom = 4 << 20

    x_item = x.dtype.itemsize
    c_item = jnp.dtype(compute_dtype).itemsize

    # Column tile: keep the whole weight resident while it is small; stream
    # it along the output-feature axis once it gets large (v7x's 64 MiB VMEM,
    # e.g. C=4096 bf16 -> 16 MiB resident otherwise).
    w_bytes_full = C * Cout * c_item
    if col_tile is not None:
        tn = col_tile
        assert tn == Cout or tn % 128 == 0
    elif w_bytes_full <= max(8 << 20, vmem_cap // 6):
        tn = Cout
    else:
        tn = 512 if Cout > 512 else Cout
    gn = pl.cdiv(Cout, tn)

    # Row tile: big (the mem-bound roofline wants >=512-row tiles), but keep
    # at least 2 row-grid steps so v7x's two TensorCores both get work, and
    # shrink tm (never the VMEM limit) until the blocks fit the budget.
    rt = 512 if row_tile is None else row_tile
    if rows <= 8:
        tm = rows
    elif rows < 2 * rt:
        tm = min(rt, _round_up(pl.cdiv(rows, 2), 8))
    else:
        tm = rt

    want_single_buf_consts = (gn == 1)   # constant index_map -> never re-fetched
    w_bufs = 1 if want_single_buf_consts else 2

    def _blocks_bytes(tm_, wb):
        x_blk = tm_ * r * C * x_item
        o_blk = tm_ * tn * x_item
        s_blk = tm_ * C * c_item
        w_blk = C * tn * c_item
        b_blk = _round_up(tn, 128) * 4
        return 2 * (x_blk + o_blk) + s_blk + wb * (w_blk + b_blk)

    while tm > 8 and _blocks_bytes(tm, w_bufs) + headroom > vmem_cap:
        tm = max(8, _round_up(tm // 2, 8))
    gm = pl.cdiv(rows, tm)

    vmem_limit = int(min(vmem_cap,
                         max(32 << 20, _blocks_bytes(tm, 2) + headroom)))

    kernel = functools.partial(_vtm_kernel, reduction_factor=r, embed_dim=C,
                               dot_precision=dot_precision)

    def _run(single_buf_consts):
        const_kw = (dict(pipeline_mode=pl.Buffered(1))
                    if single_buf_consts else {})
        return pl.pallas_call(
            kernel,
            out_shape=jax.ShapeDtypeStruct((rows, Cout), x.dtype),
            grid_spec=pltpu.PrefetchScalarGridSpec(
                num_scalar_prefetch=0,
                grid=(gm, gn),
                in_specs=[
                    # TODO(synk): sweep pipeline_mode=pl.Buffered(3) on x once
                    # VMEM headroom is confirmed on v7x (pipeline is pure DMA).
                    pl.BlockSpec((tm, r * C), lambda i, n: (i, 0)),
                    pl.BlockSpec((C, tn), lambda i, n: (0, n), **const_kw),
                    pl.BlockSpec((1, tn), lambda i, n: (0, n), **const_kw),
                ],
                out_specs=pl.BlockSpec((tm, tn), lambda i, n: (i, n)),
                scratch_shapes=[pltpu.VMEM((tm, C), compute_dtype)],
            ),
            compiler_params=pltpu.CompilerParams(
                dimension_semantics=("parallel", "arbitrary"),
                vmem_limit_bytes=vmem_limit,
            ),
        )(x2, w, b2)

    if want_single_buf_consts:
        try:
            out = _run(True)
        except Exception:
            # Some Pallas versions reject Buffered(1); default double
            # buffering is functionally identical, just uses more VMEM.
            out = _run(False)
    else:
        out = _run(False)

    return out.reshape(B, Nm, Cout)


if __name__ == "__main__":
    def _torch_ref(xn, wn, bn, r):
        Bn, Nn, Cn = xn.shape
        xm = xn.reshape(Bn, Nn // r, r, Cn).mean(axis=2)
        return xm @ wn + bn

    key = jax.random.PRNGKey(0)

    # Config 1: B=2 sequences of N=16 visual tokens, embed_dim C=256, r=2.
    B, N, C, r = 2, 16, 256, 2
    Cout = C // r
    k1, k2, k3, key = jax.random.split(key, 4)
    x = jax.random.normal(k1, (B, N, C), dtype=jnp.float32)
    weight = jax.random.normal(k2, (C, Cout), dtype=jnp.float32) / np.sqrt(C)
    bias = 0.01 * jax.random.normal(k3, (Cout,), dtype=jnp.float32)
    ref = _torch_ref(np.asarray(x), np.asarray(weight), np.asarray(bias), r)

    # Exact-semantics path (f32 MXU operands) -- tight tolerance.
    out_f32 = jax.block_until_ready(
        visual_token_merging(x, weight, bias, r, use_bf16_matmul=False))
    np.testing.assert_allclose(np.asarray(out_f32), ref, rtol=1e-4, atol=1e-5)

    # Fast path (bf16 MXU operands, f32 accumulation).
    out_bf16 = jax.block_until_ready(
        visual_token_merging(x, weight, bias, r, use_bf16_matmul=True))
    np.testing.assert_allclose(np.asarray(out_bf16), ref, rtol=2e-2, atol=2e-2)

    # bf16 activations (halves the dominant HBM input stream), bf16 output.
    out_act16 = jax.block_until_ready(
        visual_token_merging(x.astype(jnp.bfloat16), weight, bias, r))
    np.testing.assert_allclose(np.asarray(out_act16.astype(jnp.float32)), ref,
                               rtol=5e-2, atol=5e-2)

    # Config 2: exercise the weight-streaming (column-tiled) path explicitly.
    C2 = 512
    Cout2 = C2 // r
    k1, k2, k3, key = jax.random.split(key, 4)
    x_s = jax.random.normal(k1, (B, N, C2), dtype=jnp.float32)
    w_s = jax.random.normal(k2, (C2, Cout2), dtype=jnp.float32) / np.sqrt(C2)
    b_s = 0.01 * jax.random.normal(k3, (Cout2,), dtype=jnp.float32)
    ref_s = _torch_ref(np.asarray(x_s), np.asarray(w_s), np.asarray(b_s), r)
    out_s = jax.block_until_ready(
        visual_token_merging(x_s, w_s, b_s, r, col_tile=128))
    np.testing.assert_allclose(np.asarray(out_s), ref_s, rtol=3e-2, atol=3e-2)

    print("KERNEL_OK")
</pallas_src>

<mosaic_0001>
module attributes {stable_mosaic.version = 11 : i64} {
  func.func @_vtm_kernel(%arg0: i32, %arg1: i32, %arg2: memref<8x512xf32, #tpu.memory_space<vmem>>, %arg3: memref<256x128xf32, #tpu.memory_space<vmem>>, %arg4: memref<1x128xf32, #tpu.memory_space<vmem>>, %arg5: memref<8x128xf32, #tpu.memory_space<vmem>>, %arg6: memref<8x256xf32, #tpu.memory_space<vmem>>) attributes {dimension_semantics = [#tpu.dimension_semantics<parallel>, #tpu.dimension_semantics<arbitrary>], iteration_bounds = array<i64: 2, 1>, scalar_prefetch = 0 : i64, scratch_operands = 1 : i64, tpu.core_type = #tpu.core_type<tc>, window_params = [{transform_indices = @transform_0, window_bounds = array<i64: 8, 512>}, {pipeline_mode = #tpu.pipeline_mode<synchronous>, transform_indices = @transform_1, window_bounds = array<i64: 256, 128>}, {pipeline_mode = #tpu.pipeline_mode<synchronous>, transform_indices = @transform_2, window_bounds = array<i64: 1, 128>}, {transform_indices = @transform_3, window_bounds = array<i64: 8, 128>}]} {
    %c0_i32 = arith.constant 0 : i32
    %0 = arith.cmpi eq, %arg1, %c0_i32 : i32
    %1 = arith.extui %0 : i1 to i32
    %c0_i32_0 = arith.constant 0 : i32
    %2 = arith.cmpi ne, %1, %c0_i32_0 : i32
    scf.if %2 {
      %c0_8 = arith.constant 0 : index
      %c0_9 = arith.constant 0 : index
      %10 = vector.load %arg2[%c0_8, %c0_9] : memref<8x512xf32, #tpu.memory_space<vmem>>, vector<8x256xf32>
      %c0_10 = arith.constant 0 : index
      %c256 = arith.constant 256 : index
      %11 = vector.load %arg2[%c0_10, %c256] : memref<8x512xf32, #tpu.memory_space<vmem>>, vector<8x256xf32>
      %12 = arith.addf %10, %11 : vector<8x256xf32>
      %c0_11 = arith.constant 0 : index
      %c0_12 = arith.constant 0 : index
      %13 = vector.load %arg6[%c0_11, %c0_12] : memref<8x256xf32, #tpu.memory_space<vmem>>, vector<8x256xf32>
      tpu.vector_store %arg6[%c0_11, %c0_12], %12 {strides = array<i32>} : memref<8x256xf32, #tpu.memory_space<vmem>>, vector<8x256xf32>,
    } else {
    }
    %c0 = arith.constant 0 : index
    %c0_1 = arith.constant 0 : index
    %3 = vector.load %arg6[%c0, %c0_1] : memref<8x256xf32, #tpu.memory_space<vmem>>, vector<8x256xf32>
    %c0_2 = arith.constant 0 : index
    %c0_3 = arith.constant 0 : index
    %4 = vector.load %arg3[%c0_2, %c0_3] : memref<256x128xf32, #tpu.memory_space<vmem>>, vector<256x128xf32>
    %cst = arith.constant dense<0.000000e+00> : vector<8x128xf32>
    %5 = tpu.matmul %3, %4, %cst {dimension_numbers = #tpu.dot_dimension_numbers<[1], [0], [0], [1], [0, 0, 1, 1], [], []>, precision = #tpu.contract_precision<fp32>} : vector<8x256xf32>, vector<256x128xf32>, vector<8x128xf32> -> vector<8x128xf32>
    %c0_4 = arith.constant 0 : index
    %c0_5 = arith.constant 0 : index
    %6 = vector.load %arg4[%c0_4, %c0_5] : memref<1x128xf32, #tpu.memory_space<vmem>>, vector<1x128xf32>
    %7 = vector.broadcast %6 : vector<1x128xf32> to vector<8x128xf32>
    %8 = arith.addf %5, %7 : vector<8x128xf32>
    %c0_6 = arith.constant 0 : index
    %c0_7 = arith.constant 0 : index
    %9 = vector.load %arg5[%c0_6, %c0_7] : memref<8x128xf32, #tpu.memory_space<vmem>>, vector<8x128xf32>
    tpu.vector_store %arg5[%c0_6, %c0_7], %8 {strides = array<i32>} : memref<8x128xf32, #tpu.memory_space<vmem>>, vector<8x128xf32>,
    return
  }
  func.func @transform_0(%arg0: i32, %arg1: i32) -> (i32, i32) {
    %c0_i32 = arith.constant 0 : i32
    %c0_i32_0 = arith.constant 0 : i32
    return %arg0, %c0_i32 : i32, i32
  }
  func.func @transform_1(%arg0: i32, %arg1: i32) -> (i32, i32) {
    %c0_i32 = arith.constant 0 : i32
    %c0_i32_0 = arith.constant 0 : i32
    return %c0_i32, %arg1 : i32, i32
  }
  func.func @transform_2(%arg0: i32, %arg1: i32) -> (i32, i32) {
    %c0_i32 = arith.constant 0 : i32
    %c0_i32_0 = arith.constant 0 : i32
    return %c0_i32, %arg1 : i32, i32
  }
  func.func @transform_3(%arg0: i32, %arg1: i32) -> (i32, i32) {
    %c0_i32 = arith.constant 0 : i32
    return %arg0, %arg1 : i32, i32
  }
}

module attributes {stable_mosaic.version = 11 : i64} {
  func.func @_vtm_kernel(%arg0: i32, %arg1: i32, %arg2: memref<8x512xf32, #tpu.memory_space<vmem>>, %arg3: memref<256x128xf32, #tpu.memory_space<vmem>>, %arg4: memref<1x128xf32, #tpu.memory_space<vmem>>, %arg5: memref<8x128xf32, #tpu.memory_space<vmem>>, %arg6: memref<8x256xf32, #tpu.memory_space<vmem>>) attributes {dimension_semantics = [#tpu.dimension_semantics<parallel>, #tpu.dimension_semantics<arbitrary>], iteration_bounds = array<i64: 2, 1>, scalar_prefetch = 0 : i64, scratch_operands = 1 : i64, tpu.core_type = #tpu.core_type<tc>, window_params = [{transform_indices = @transform_0, window_bounds = array<i64: 8, 512>}, {transform_indices = @transform_1, window_bounds = array<i64: 256, 128>}, {transform_indices = @transform_2, window_bounds = array<i64: 1, 128>}, {transform_indices = @transform_3, window_bounds = array<i64: 8, 128>}]} {
    %c0_i32 = arith.constant 0 : i32
    %0 = arith.cmpi eq, %arg1, %c0_i32 : i32
    %1 = arith.extui %0 : i1 to i32
    %c0_i32_0 = arith.constant 0 : i32
    %2 = arith.cmpi ne, %1, %c0_i32_0 : i32
    scf.if %2 {
      %c0_8 = arith.constant 0 : index
      %c0_9 = arith.constant 0 : index
      %10 = vector.load %arg2[%c0_8, %c0_9] : memref<8x512xf32, #tpu.memory_space<vmem>>, vector<8x256xf32>
      %c0_10 = arith.constant 0 : index
      %c256 = arith.constant 256 : index
      %11 = vector.load %arg2[%c0_10, %c256] : memref<8x512xf32, #tpu.memory_space<vmem>>, vector<8x256xf32>
      %12 = arith.addf %10, %11 : vector<8x256xf32>
      %c0_11 = arith.constant 0 : index
      %c0_12 = arith.constant 0 : index
      %13 = vector.load %arg6[%c0_11, %c0_12] : memref<8x256xf32, #tpu.memory_space<vmem>>, vector<8x256xf32>
      tpu.vector_store %arg6[%c0_11, %c0_12], %12 {strides = array<i32>} : memref<8x256xf32, #tpu.memory_space<vmem>>, vector<8x256xf32>,
    } else {
    }
    %c0 = arith.constant 0 : index
    %c0_1 = arith.constant 0 : index
    %3 = vector.load %arg6[%c0, %c0_1] : memref<8x256xf32, #tpu.memory_space<vmem>>, vector<8x256xf32>
    %c0_2 = arith.constant 0 : index
    %c0_3 = arith.constant 0 : index
    %4 = vector.load %arg3[%c0_2, %c0_3] : memref<256x128xf32, #tpu.memory_space<vmem>>, vector<256x128xf32>
    %cst = arith.constant dense<0.000000e+00> : vector<8x128xf32>
    %5 = tpu.matmul %3, %4, %cst {dimension_numbers = #tpu.dot_dimension_numbers<[1], [0], [0], [1], [0, 0, 1, 1], [], []>, precision = #tpu.contract_precision<fp32>} : vector<8x256xf32>, vector<256x128xf32>, vector<8x128xf32> -> vector<8x128xf32>
    %c0_4 = arith.constant 0 : index
    %c0_5 = arith.constant 0 : index
    %6 = vector.load %arg4[%c0_4, %c0_5] : memref<1x128xf32, #tpu.memory_space<vmem>>, vector<1x128xf32>
    %7 = vector.broadcast %6 : vector<1x128xf32> to vector<8x128xf32>
    %8 = arith.addf %5, %7 : vector<8x128xf32>
    %c0_6 = arith.constant 0 : index
    %c0_7 = arith.constant 0 : index
    %9 = vector.load %arg5[%c0_6, %c0_7] : memref<8x128xf32, #tpu.memory_space<vmem>>, vector<8x128xf32>
    tpu.vector_store %arg5[%c0_6, %c0_7], %8 {strides = array<i32>} : memref<8x128xf32, #tpu.memory_space<vmem>>, vector<8x128xf32>,
    return
  }
  func.func @transform_0(%arg0: i32, %arg1: i32) -> (i32, i32) {
    %c0_i32 = arith.constant 0 : i32
    %c0_i32_0 = arith.constant 0 : i32
    return %arg0, %c0_i32 : i32, i32
  }
  func.func @transform_1(%arg0: i32, %arg1: i32) -> (i32, i32) {
    %c0_i32 = arith.constant 0 : i32
    %c0_i32_0 = arith.constant 0 : i32
    return %c0_i32, %arg1 : i32, i32
  }
  func.func @transform_2(%arg0: i32, %arg1: i32) -> (i32, i32) {
    %c0_i32 = arith.constant 0 : i32
    %c0_i32_0 = arith.constant 0 : i32
    return %c0_i32, %arg1 : i32, i32
  }
  func.func @transform_3(%arg0: i32, %arg1: i32) -> (i32, i32) {
    %c0_i32 = arith.constant 0 : i32
    return %arg0, %arg1 : i32, i32
  }
}

</mosaic_0001>

<bundles_post_ra>
// kernel: tpu_custom_call.1
= control target key start
LH: loop header
LB: loop body
LE: loop exit
PB: predicated region body
PF: predicated region fallthrough
CT: control target
= control target key end

     0   :  { %8 = vsyncpa [#allocation4], 0  ;;  %s2559_s0 = inlined_call_operand.hbm [shape: f32[16,512], index: 0, kind: input, shape index: {}]   ;;  %s2560_s1 = inlined_call_operand.hbm [shape: f32[256,128], index: 1, kind: input, shape index: {}]   ;;  %s2561_s2 = inlined_call_operand.vmem [shape: f32[1,128], index: 2, kind: input, shape index: {}]   ;;  %s2562_s3 = inlined_call_operand.hbm [shape: f32[16,128], index: 3, kind: output, shape index: {}]  }
   0x1   :  { %10 = vsyncpa [#allocation4 + $0x1], 0 }
   0x2   :  { %11 = vsyncpa [#allocation7], 0 }
   0x3   :  { %12 = vsyncpa [#allocation5], 0 }
   0x4   :  { %14 = vsyncpa [#allocation5 + $0x1], 0  ;;  %s1938_s12 = smov 0   ;;  %s1940_s13 = smov 0  }
   0x5   :  { %s1942_s14 = smov 0   ;;  %s1944_s15 = smov 0  }
   0x6   :  { %s1946_s16 = smov 0   ;;  %s1948_s17 = smov 0  }
   0x7 LB: > { %s1271_s18 = sadd.s32 4294967295, %s1911_s17   ;;  %s1272_s19 = sadd.s32 4294967294, %s1911_s17   ;;  %s1911_s17 = sphi %s1948_s17, %s20_s17   ;;  %s1907_s16 = sphi %s1946_s16, %s2672_s16   ;;  %s1903_s15 = sphi %s1944_s15, %s2671_s15   ;;  %s1899_s14 = sphi %s1942_s14, %s2670_s14   ;;  %s1895_s13 = sphi %s1940_s13, %s2669_s13   ;;  %s1891_s12 = sphi %s1938_s12, %s2668_s12  }
   0x8   : > { %p52_p0 = scmp.ne.s32.totalorder %s1895_s13, %s1891_s12  ;;  %p1972_p1 = scmp.eq.s32.totalorder %s1271_s18, 0 }
   0x9   : > { %p1976_p2 = scmp.eq.s32.totalorder %s1271_s18, 1  ;;  %p136_p3 = scmp.eq.s32.totalorder %s1272_s19, 1 }
   0xa   : > { %s2610_s20 = scalar_select %p1972_p1, 1, 0 }
   0xb   : > { %s2611_s21 = scalar_select %p1976_p2, 1, 0 }
   0xc   : > { %p1982_p4 = por %p1972_p1, %p52_p0  ;;  %p1273_p5 = scmp.ge.s32.totalorder %s1911_s17, 1 }
   0xd   : > { %p1987_p6 = por %p136_p3, %p52_p0  ;;  %p143_p7 = scmp.lt.s32.totalorder %s1911_s17, 3 }
   0xe   : > { %s2612_s22 = scalar_select %p1982_p4, 1, 0 }
   0xf   : > { %s2613_s23 = scalar_select %p1987_p6, 1, 0 }
  0x10   : > { %p1992_p8 = pnand %p1273_p5, %p143_p7  ;;  %s1913_s25 = smov [#allocation6]  }
  0x11   : > { %s157_s26 = sshll.u32 %s1913_s25, 4  ;;  %s32_s28 = sadd.s32 1, %s1907_s16  ;;  %s158_s26 = int_to_ptr.vmem [resolvable:$true] %s157_s26 }
  0x12   : > { %s2614_s24 = scalar_select %p1992_p8, 1, 0 }
  0x13   : > { %p1700_p9 = pneg %p1992_p8  ;;  %s1767_s4 = scalar_lea.hbm %s2560_s1, 4096 }
  0x14   : > { %p1768_p12 = scmp.ne.s32.totalorder %s2560_s1, %s1767_s4  ;;  %p1774_p5 = scmp.lt.u32.totalorder %s1767_s4, %s2560_s1 }
  0x15   : > { %p2001_p11 = pnand %p1700_p9, %p1972_p1 }
  0x17   : > { %p1769_p13 = pneg %p2001_p11 }
  0x19   : > { %p1770_p0 = pnand %p1769_p13, %p1768_p12 }
  0x1b   : > { %p1771_p3 = pneg %p1770_p0 }
  0x1d   : > { %p1776_p7 = pnand %p1774_p5, %p1771_p3 }
  0x1f   : > { %1779 = shalt.err (!%p1776_p7)
}
  0x20   : > { %s1780_s9 = scalar_lea.vmem %s158_s26, 4096  ;;  %p1788_p1 = scmp.lt.s32.totalorder %s158_s26, %s158_s26 }
  0x21   : > { %p1781_p9 = scmp.ne.s32.totalorder %s158_s26, %s1780_s9  ;;  %p1789_p4 = scmp.lt.s32.totalorder %s1780_s9, %s1780_s9 }
  0x23   : > { %p1783_p10 = pnand %p1781_p9, %p1769_p13  ;;  %p1790_p8 = por %p1789_p4, %p1788_p1 }
  0x25   : > { %p1784_p6 = pneg %p1783_p10 }
  0x27   : > { %p1791_p2 = pnand %p1790_p8, %p1784_p6 }
  0x29   : > { %1794 = shalt.err (!%p1791_p2)
}
  0x2a   : > { %s1914_s10 = smov 128   ;;  %s1915_s11 = smov 8  }
  0x2b   : > { %1703 = dma.hbm_to_vmem [thread:$0]  (!%p2001_p11), %s2560_s1, 4096, %s158_s26, [#allocation7], %s1914_s10, %s1914_s10, %s1915_s11  }
  0x2c   : > { %p34_p1 = scmp.ge.s32.totalorder %s32_s28, 2  ;;  %s39_s25 = sadd.s32 1, %s1899_s14 }
  0x2d   : > { %p46_p2 = scmp.ne.s32.totalorder %s1899_s14, %s1895_s13  ;;  %p47_p4 = scmp.eq.s32.totalorder %s1911_s17, 0 }
  0x2e   : > { %s2674_s28 = smov (%p34_p1, %s32_s28), 0  ;;  %p2617_p8 = scmp.ne.s32.totalorder %s2611_s21, 0 }
  0x2f   : > { %p2028_p6 = por %p47_p4, %p46_p2  ;;  %s36_s27 = ssub.s32 %s1907_s16, %s2674_s28 }
  0x30   : > { %p2034_p10 = por %p2617_p8, %p46_p2  ;;  %p1713_p12 = scmp.lt.s32.totalorder %s1911_s17, 2 }
  0x31   : > { %p37_p11 = scmp.eq.s32.totalorder %s36_s27, 0  ;;  %s177_s26 = sand.u32 1, %s1899_s14  }
  0x32   : > { %s1277_s4 = sshll.u32 %s177_s26, 5  ;;  %s1289_s6 = sshll.u32 %s1907_s16, 9 }
  0x33   : > { %s2043_s5 = scalar_select %p37_p11, %s1899_s14, %s39_s25  }
  0x34   : > { %s2049_s9 = scalar_lea.hbm %s2559_s0, %s1289_s6  ;;  %s181_s21 = scalar_lea.vmem [#allocation3], %s1277_s4 }
  0x35   : > { %s189_s10 = sshll.u32 %s181_s21, 4  ;;  %p2055_p13 = pnand %p1713_p12, %p2028_p6  ;;  %s2051_s10 = int_to_ptr.vmem [resolvable:$true] %s189_s10 }
  0x36   : > { %s178_s18 = scalar_lea.sflag [#allocation4], %s177_s26  ;;  %s1795_s19 = scalar_lea.hbm %s2049_s9, 512 }
  0x37   : > { %p1796_p0 = scmp.ne.s32.totalorder %s2049_s9, %s1795_s19  ;;  %p1797_p3 = pneg %p2055_p13 }
  0x38   : > { %s1800_s4 = scalar_lea.hbm %s2559_s0, 1024  ;;  %p1801_p9 = scmp.lt.u32.totalorder %s2049_s9, %s2559_s0 }
  0x39   : > { %p1798_p5 = pnand %p1797_p3, %p1796_p0  ;;  %p1802_p1 = scmp.lt.u32.totalorder %s1800_s4, %s1795_s19 }
  0x3a   : > { %p1804_p4 = scmp.lt.u32.totalorder %s1795_s19, %s2049_s9 }
  0x3b   : > { %p1799_p7 = pneg %p1798_p5  ;;  %p1803_p2 = por %p1802_p1, %p1801_p9 }
  0x3d   : > { %p1805_p6 = por %p1804_p4, %p1803_p2 }
  0x3f   : > { %p1806_p8 = pnand %p1805_p6, %p1799_p7 }
  0x41   : > { %1809 = shalt.err (!%p1806_p8)
}
  0x42   : > { %s1810_s26 = scalar_lea.vmem %s2051_s10, 512  ;;  %s1916_s7 = smov [#allocation3]  }
  0x43   : > { %p1811_p12 = scmp.ne.s32.totalorder %s2051_s10, %s1810_s26  ;;  %s1815_s8 = sshll.u32 %s1916_s7, 4  ;;  %s1816_s8 = int_to_ptr.vmem [resolvable:$false] %s1815_s8 }
  0x44   : > { %s1817_s21 = scalar_lea.vmem %s1816_s8, 1024  ;;  %p1818_p5 = scmp.lt.s32.totalorder %s2051_s10, %s1816_s8 }
  0x45   : > { %p1813_p11 = pnand %p1811_p12, %p1797_p3  ;;  %p1819_p9 = scmp.lt.s32.totalorder %s1817_s21, %s1810_s26 }
  0x47   : > { %p1814_p0 = pneg %p1813_p11  ;;  %p1820_p1 = por %p1819_p9, %p1818_p5 }
  0x49   : > { %p1821_p2 = pnand %p1820_p1, %p1814_p0 }
  0x4b   : > { %1824 = shalt.err (!%p1821_p2)
}
  0x4c   : > { %1707 = dma.hbm_to_vmem [thread:$0]  (!%p2055_p13), %s2049_s9, 512, %s2051_s10, %s178_s18  }
  0x4d   : > { %p2620_p7 = scmp.ne.s32.totalorder %s2614_s24, 0 }
  0x4f   : > { %198 = sbr.rel (%p2620_p7) target bundleno = 449 (0x1c1), region = 32 }
  0x56   : > { %s2087_s19 = sand.u32 1, %s1895_s13   ;;  %p2621_p3 = scmp.ne.s32.totalorder %s2612_s22, 0 }
  0x57   : > { %s1281_s25 = sshll.u32 %s2087_s19, 5  ;;  %s201_s27 = scalar_lea.sflag [#allocation4], %s2087_s19 }
  0x58   : > { %s2091_s4 = scalar_lea.vmem [#allocation3], %s1281_s25 }
  0x59   : > { %1878 = dma.done.wait (%p2621_p3), %s201_s27, 512  }
  0x5a   : > { %1880 = vsyncadd (%p2621_p3), %s201_s27, 4294966784  ;;  %p2622_p13 = scmp.ne.s32.totalorder %s2610_s20, 0 }
  0x5c   : > { %1882 = dma.done.wait (%p2622_p13), [#allocation7], 4096  }
  0x5d   : > { %1884 = vsyncadd (%p2622_p13), [#allocation7], 4294963200  ;;  %v267_v0 = vld [vmem:[#allocation6 + $0x80] sm:$0xff]  ;;  %v268_v1 = vld [vmem:[#allocation6 + $0x88] sm:$0xff]  ;;  %s1283_s24 = sshll.u32 %s2087_s19, 3  ;;  %s1286_s9 = sshll.u32 %s1903_s15, 7 }
  0x5e   : > { %v251_v2 = vld [vmem:[#allocation6] sm:$0xff]  ;;  %v339_v3 = vand.u32 4294901760, %v267_v0  ;;  %v342_v4 = vand.u32 4294901760, %v268_v1  ;;  %v252_v5 = vld [vmem:[#allocation6 + $0x8] sm:$0xff]  ;;  %v269_v7 = vld [vmem:[#allocation6 + $0x90] sm:$0xff]  ;;  %s233_s10 = scalar_lea.vmem [#allocation8], %s1283_s24  ;;  %s2510_s6 = scalar_lea.hbm %s2562_s3, %s1286_s9 }
  0x5f   : > { %v291_v6 = vand.u32 4294901760, %v251_v2  ;;  %v270_v8 = vld [vmem:[#allocation6 + $0x98] sm:$0xff]  ;;  %v294_v9 = vand.u32 4294901760, %v252_v5  ;;  %v345_v10 = vand.u32 4294901760, %v269_v7  ;;  %v253_v12 = vld [vmem:[#allocation6 + $0x10] sm:$0xff]  ;;  %v271_v18 = vld [vmem:[#allocation6 + $0xa0] sm:$0xff] }
  0x60   : > { %v348_v11 = vand.u32 4294901760, %v270_v8  ;;  %v254_v13 = vld [vmem:[#allocation6 + $0x18] sm:$0xff]  ;;  %v2101_v14 = vpack.c.bf16 %v342_v4, %v339_v3  ;;  %v297_v16 = vand.u32 4294901760, %v253_v12  ;;  %v272_v19 = vld [vmem:[#allocation6 + $0xa8] sm:$0xff]  ;;  %v255_v23 = vld [vmem:[#allocation6 + $0x20] sm:$0xff]  ;;  %v351_v29 = vand.u32 4294901760, %v271_v18 }
  0x61   : > { %v2103_v15 = vsub.f32 %v251_v2, %v291_v6  ;;  %v300_v17 = vand.u32 4294901760, %v254_v13  ;;  %v2105_v20 = vpack.c.bf16 %v294_v9, %v291_v6  ;;  %v2107_v21 = vsub.f32 %v252_v5, %v294_v9  ;;  %v256_v24 = vld [vmem:[#allocation6 + $0x28] sm:$0xff]  ;;  %v273_v37 = vld [vmem:[#allocation6 + $0xb0] sm:$0xff]  ;;  %v274_v42 = vld [vmem:[#allocation6 + $0xb8] sm:$0xff]  ;;  %s1168_s11 = sshll.u32 %s233_s10, 4  ;;  %s1154_s26 = scalar_lea.sflag [#allocation5], %s2087_s19  ;;  %s2512_s11 = int_to_ptr.vmem [resolvable:$true] %s1168_s11 }
  0x62   : > { %v2109_v22 = vpack.c.bf16 %v348_v11, %v345_v10  ;;  %1501 = vmatprep.subr.bf16.mxu0 %v2101_v14  ;;  %v2112_v25 = vsub.f32 %v269_v7, %v345_v10  ;;  %v2114_v26 = vsub.f32 %v270_v8, %v348_v11  ;;  %v2118_v28 = vsub.f32 %v253_v12, %v297_v16  ;;  %v257_v55 = vld [vmem:[#allocation6 + $0x30] sm:$0xff]  ;;  %v258_v56 = vld [vmem:[#allocation6 + $0x38] sm:$0xff]  ;;  %v275_v5 = vld [vmem:[#allocation6 + $0xc0] sm:$0xff]  ;;  %s1825_s7 = scalar_lea.vmem %s2512_s11, 128  ;;  %s1917_s15 = smov [#allocation8]  }
  0x63   : > { %v2116_v27 = vpack.c.bf16 %v300_v17, %v297_v16  ;;  %1503 = vmatpush3.bf16.msra.mxu0 %v2105_v20  ;;  %v354_v30 = vand.u32 4294901760, %v272_v19  ;;  %v2121_v31 = vsub.f32 %v267_v0, %v339_v3  ;;  %v2123_v32 = vsub.f32 %v268_v1, %v342_v4  ;;  %v276_v6 = vld [vmem:[#allocation6 + $0xc8] sm:$0xff]  ;;  %v259_v11 = vld [vmem:[#allocation6 + $0x40] sm:$0xff]  ;;  %p1826_p4 = scmp.ne.s32.totalorder %s2512_s11, %s1825_s7  ;;  %s1829_s8 = sshll.u32 %s1917_s15, 4  ;;  %s1830_s8 = int_to_ptr.vmem [resolvable:$false] %s1829_s8 }
  0x64   : > { %1505 = vmatprep.subr.bf16.mxu0 %v2109_v22  ;;  %v303_v33 = vand.u32 4294901760, %v255_v23  ;;  %v306_v34 = vand.u32 4294901760, %v256_v24  ;;  %v2584_v35 = vand.u32 4294901760, %v2103_v15  ;;  %v2582_v36 = vand.u32 4294901760, %v2107_v21  ;;  %s1831_s21 = scalar_lea.vmem %s1830_s8, 256  ;;  %p1832_p12 = scmp.lt.s32.totalorder %s2512_s11, %s1830_s8 }
  0x65   : > { %v2128_v38 = vsub.f32 %v254_v13, %v300_v17  ;;  %v2130_v39 = vpack.c.bf16 %v354_v30, %v351_v29  ;;  %v2132_v40 = vsub.f32 %v271_v18, %v351_v29  ;;  %v2586_v41 = vand.u32 4294901760, %v2121_v31  ;;  %v260_v29 = vld [vmem:[#allocation6 + $0x48] sm:$0xff]  ;;  %p1827_p6 = pnand %p1826_p4, %p2034_p10  ;;  %p1833_p11 = scmp.lt.s32.totalorder %s1831_s21, %s1825_s7 }
  0x66   : > { %v2135_v43 = vsub.f32 %v272_v19, %v354_v30  ;;  %v2585_v44 = vand.u32 4294901760, %v2123_v32  ;;  %v2138_v45 = vpack.c.bf16 %v306_v34, %v303_v33  ;;  %v2140_v46 = vsub.f32 %v255_v23, %v303_v33 }
  0x67   : > { %1507 = vmatpush3.bf16.msra.mxu0 %v2116_v27  ;;  %v518_v47 = vsub.f32 %v2121_v31, %v2586_v41  ;;  %v406_v48 = vsub.f32 %v2103_v15, %v2584_v35  ;;  %v413_v49 = vsub.f32 %v2107_v21, %v2582_v36  ;;  %v357_v50 = vand.u32 4294901760, %v273_v37  ;;  %p1828_p8 = pneg %p1827_p6  ;;  %p1834_p0 = por %p1833_p11, %p1832_p12 }
  0x68   : > { %1509 = vmatprep.subr.bf16.mxu0 %v2130_v39  ;;  %v525_v51 = vsub.f32 %v2123_v32, %v2585_v44  ;;  %v360_v52 = vand.u32 4294901760, %v274_v42  ;;  %v2579_v53 = vand.u32 4294901760, %v2112_v25  ;;  %v2577_v54 = vand.u32 4294901760, %v2114_v26 }
  0x69   : > { %v519_v57 = vand.u32 4294901760, %v518_v47  ;;  %v2158_v58 = vsub.f32 %v256_v24, %v306_v34  ;;  %v407_v59 = vand.u32 4294901760, %v406_v48  ;;  %v414_v60 = vand.u32 4294901760, %v413_v49  ;;  %p1835_p5 = pnand %p1834_p0, %p1828_p8 }
  0x6a   : > { %v526_v61 = vand.u32 4294901760, %v525_v51  ;;  %v2160_v62 = vpack.c.bf16 %v360_v52, %v357_v50  ;;  %v2162_v63 = vsub.f32 %v273_v37, %v357_v50  ;;  %v532_v0 = vsub.f32 %v2112_v25, %v2579_v53 }
  0x6b   : > { %1511 = vmatpush3.bf16.msra.mxu0 %v2138_v45  ;;  %v1534_v1 = vpack.c.bf16 %v414_v60, %v407_v59  ;;  %v539_v2 = vsub.f32 %v2114_v26, %v2577_v54  ;;  %v309_v3 = vand.u32 4294901760, %v257_v55  ;;  %v312_v4 = vand.u32 4294901760, %v258_v56  ;;  %v278_v59 = vld [vmem:[#allocation6 + $0xd8] sm:$0xff] }
  0x6c   : > { %v1532_v7 = vpack.c.bf16 %v526_v61, %v519_v57  ;;  %1513 = vmatprep.subr.bf16.mxu0 %v2160_v62  ;;  %v533_v8 = vand.u32 4294901760, %v532_v0  ;;  %v2576_v9 = vand.u32 4294901760, %v2118_v28  ;;  %v2574_v10 = vand.u32 4294901760, %v2128_v38  ;;  %v277_v57 = vld [vmem:[#allocation6 + $0xd0] sm:$0xff]  ;;  %v282_v54 = vld [vmem:[#allocation6 + $0xf8] sm:$0xff] }
  0x6d   : > { %v2174_v12 = vsub.f32 %v274_v42, %v360_v52  ;;  %v540_v13 = vand.u32 4294901760, %v539_v2  ;;  %v2176_v16 = vpack.c.bf16 %v312_v4, %v309_v3  ;;  %v2178_v17 = vsub.f32 %v257_v55, %v309_v3 }
  0x6e   : > { %1533 = vmatprep.subr.bf16.mxu1 %v1532_v7  ;;  %v420_v18 = vsub.f32 %v2118_v28, %v2576_v9  ;;  %v427_v19 = vsub.f32 %v2128_v38, %v2574_v10  ;;  %v363_v23 = vand.u32 4294901760, %v275_v5  ;;  %v366_v24 = vand.u32 4294901760, %v276_v6  ;;  %v281_v9 = vld [vmem:[#allocation6 + $0xf0] sm:$0xff] }
  0x6f   : > { %1535 = vmatpush3.bf16.msra.mxu1 %v1534_v1  ;;  %v1536_v30 = vpack.c.bf16 %v540_v13, %v533_v8  ;;  %1515 = vmatpush3.bf16.msra.mxu0 %v2176_v16  ;;  %v2572_v33 = vand.u32 4294901760, %v2132_v40  ;;  %v2571_v34 = vand.u32 4294901760, %v2135_v43  ;;  %v315_v37 = vand.u32 4294901760, %v259_v11  ;;  %v261_v1 = vld [vmem:[#allocation6 + $0x50] sm:$0xff] }
  0x70   : > { %v2189_v42 = vsub.f32 %v258_v56, %v312_v4  ;;  %v421_v47 = vand.u32 4294901760, %v420_v18  ;;  %v428_v48 = vand.u32 4294901760, %v427_v19  ;;  %v2191_v49 = vpack.c.bf16 %v366_v24, %v363_v23  ;;  %v262_v18 = vld [vmem:[#allocation6 + $0x58] sm:$0xff] }
  0x71   : > { %1537 = vmatprep.subr.bf16.mxu1 %v1536_v30  ;;  %v2193_v50 = vsub.f32 %v275_v5, %v363_v23  ;;  %v546_v51 = vsub.f32 %v2132_v40, %v2572_v33  ;;  %v553_v52 = vsub.f32 %v2135_v43, %v2571_v34  ;;  %v318_v55 = vand.u32 4294901760, %v260_v29 }
  0x72   : > { %v1538_v56 = vpack.c.bf16 %v428_v48, %v421_v47  ;;  %1517 = vmatprep.subr.bf16.mxu0 %v2191_v49  ;;  %v2202_v60 = vsub.f32 %v276_v6, %v366_v24  ;;  %v2569_v61 = vand.u32 4294901760, %v2140_v46  ;;  %v2567_v0 = vand.u32 4294901760, %v2158_v58 }
  0x73   : > { %v547_v2 = vand.u32 4294901760, %v546_v51  ;;  %v554_v3 = vand.u32 4294901760, %v553_v52  ;;  %v2206_v4 = vpack.c.bf16 %v318_v55, %v315_v37  ;;  %v2208_v5 = vsub.f32 %v259_v11, %v315_v37 }
  0x74   : > { %1539 = vmatpush3.bf16.msra.mxu1 %v1538_v56  ;;  %v434_v7 = vsub.f32 %v2140_v46, %v2569_v61  ;;  %v441_v6 = vsub.f32 %v2158_v58, %v2567_v0  ;;  %v369_v8 = vand.u32 4294901760, %v277_v57  ;;  %v372_v13 = vand.u32 4294901760, %v278_v59  ;;  %v280_v0 = vld [vmem:[#allocation6 + $0xe8] sm:$0xff] }
  0x75   : > { %v1540_v19 = vpack.c.bf16 %v554_v3, %v547_v2  ;;  %1519 = vmatpush3.bf16.msra.mxu0 %v2206_v4  ;;  %v2568_v23 = vand.u32 4294901760, %v2162_v63  ;;  %v2570_v11 = vand.u32 4294901760, %v2174_v12  ;;  %v321_v24 = vand.u32 4294901760, %v261_v1  ;;  %v279_v3 = vld [vmem:[#allocation6 + $0xe0] sm:$0xff] }
  0x76   : > { %v2219_v30 = vsub.f32 %v260_v29, %v318_v55  ;;  %v435_v37 = vand.u32 4294901760, %v434_v7  ;;  %v442_v47 = vand.u32 4294901760, %v441_v6  ;;  %v2221_v48 = vpack.c.bf16 %v372_v13, %v369_v8  ;;  %v263_v6 = vld [vmem:[#allocation6 + $0x60] sm:$0xff] }
  0x77   : > { %1541 = vmatprep.subr.bf16.mxu1 %v1540_v19  ;;  %v2223_v51 = vsub.f32 %v277_v57, %v369_v8  ;;  %v560_v52 = vsub.f32 %v2162_v63, %v2568_v23  ;;  %v567_v56 = vsub.f32 %v2174_v12, %v2570_v11  ;;  %v324_v2 = vand.u32 4294901760, %v262_v18  ;;  %v264_v11 = vld [vmem:[#allocation6 + $0x68] sm:$0xff] }
  0x78   : > { %v1542_v29 = vpack.c.bf16 %v442_v47, %v435_v37  ;;  %1521 = vmatprep.subr.bf16.mxu0 %v2221_v48  ;;  %v2232_v55 = vsub.f32 %v278_v59, %v372_v13  ;;  %v2573_v7 = vand.u32 4294901760, %v2178_v17  ;;  %v2575_v57 = vand.u32 4294901760, %v2189_v42 }
  0x79   : > { %v561_v8 = vand.u32 4294901760, %v560_v52  ;;  %v568_v19 = vand.u32 4294901760, %v567_v56  ;;  %v2236_v23 = vpack.c.bf16 %v324_v2, %v321_v24  ;;  %v2238_v61 = vsub.f32 %v261_v1, %v321_v24 }
  0x7a   : > { %1543 = vmatpush3.bf16.msra.mxu1 %v1542_v29  ;;  %v448_v37 = vsub.f32 %v2178_v17, %v2573_v7  ;;  %v455_v59 = vsub.f32 %v2189_v42, %v2575_v57  ;;  %v375_v13 = vand.u32 4294901760, %v279_v3  ;;  %v378_v47 = vand.u32 4294901760, %v280_v0 }
  0x7b   : > { %2623 = vst [vmem:[#allocation12_spill] sm:$0xff] %v2236_v23  ;;  %v1544_v34 = vpack.c.bf16 %v568_v19, %v561_v8  ;;  %1523 = vmatpush3.bf16.msra.mxu0 %v2236_v23  ;;  %v2578_v52 = vand.u32 4294901760, %v2193_v50  ;;  %v2580_v1 = vand.u32 4294901760, %v2202_v60  ;;  %v327_v24 = vand.u32 4294901760, %v263_v6 }
  0x7c   : > { %v2249_v56 = vsub.f32 %v262_v18, %v324_v2  ;;  %v449_v29 = vand.u32 4294901760, %v448_v37  ;;  %v456_v33 = vand.u32 4294901760, %v455_v59  ;;  %v2251_v7 = vpack.c.bf16 %v378_v47, %v375_v13  ;;  %v265_v37 = vld [vmem:[#allocation6 + $0x70] sm:$0xff] }
  0x7d   : > { %1545 = vmatprep.subr.bf16.mxu1 %v1544_v34  ;;  %v2253_v10 = vsub.f32 %v279_v3, %v375_v13  ;;  %v574_v8 = vsub.f32 %v2193_v50, %v2578_v52  ;;  %v581_v19 = vsub.f32 %v2202_v60, %v2580_v1  ;;  %v330_v57 = vand.u32 4294901760, %v264_v11  ;;  %v266_v1 = vld [vmem:[#allocation6 + $0x78] sm:$0xff] }
  0x7e   : > { %2624 = vst [vmem:[#allocation13_spill] sm:$0xff] %v2251_v7  ;;  %v1546_v18 = vpack.c.bf16 %v456_v33, %v449_v29  ;;  %1525 = vmatprep.subr.bf16.mxu0 %v2251_v7  ;;  %v2262_v2 = vsub.f32 %v280_v0, %v378_v47  ;;  %v2581_v34 = vand.u32 4294901760, %v2208_v5  ;;  %v2583_v3 = vand.u32 4294901760, %v2219_v30 }
  0x7f   : > { %v575_v59 = vand.u32 4294901760, %v574_v8  ;;  %v582_v13 = vand.u32 4294901760, %v581_v19  ;;  %v2266_v52 = vpack.c.bf16 %v330_v57, %v327_v24  ;;  %v2268_v53 = vsub.f32 %v263_v6, %v327_v24 }
  0x80   : > { %1547 = vmatpush3.bf16.msra.mxu1 %v1546_v18  ;;  %v462_v33 = vsub.f32 %v2208_v5, %v2581_v34  ;;  %v469_v0 = vsub.f32 %v2219_v30, %v2583_v3  ;;  %v381_v47 = vand.u32 4294901760, %v281_v9  ;;  %v384_v29 = vand.u32 4294901760, %v282_v54 }
  0x81   : > { %2625 = vst [vmem:[#allocation14_spill] sm:$0xff] %v2266_v52  ;;  %v1548_v8 = vpack.c.bf16 %v582_v13, %v575_v59  ;;  %1527 = vmatpush3.bf16.msra.mxu0 %v2266_v52  ;;  %v2589_v6 = vand.u32 4294901760, %v2223_v51  ;;  %v2594_v24 = vand.u32 4294901760, %v2232_v55  ;;  %v333_v19 = vand.u32 4294901760, %v265_v37 }
  0x82   : > { %v2279_v18 = vsub.f32 %v264_v11, %v330_v57  ;;  %v463_v34 = vand.u32 4294901760, %v462_v33  ;;  %v470_v36 = vand.u32 4294901760, %v469_v0  ;;  %v2281_v3 = vpack.c.bf16 %v384_v29, %v381_v47  ;;  %v242_v11 = vld [vmem:[%s2091_s4 + $0x8] sm:$0xff]  ;;  %v244_v57 = vld [vmem:[%s2091_s4 + $0x18] sm:$0xff] }
  0x83   : > { %1549 = vmatprep.subr.bf16.mxu1 %v1548_v8  ;;  %v2283_v35 = vsub.f32 %v281_v9, %v381_v47  ;;  %v588_v59 = vsub.f32 %v2223_v51, %v2589_v6  ;;  %v595_v13 = vsub.f32 %v2232_v55, %v2594_v24  ;;  %v336_v44 = vand.u32 4294901760, %v266_v1  ;;  %v241_v47 = vld [vmem:[%s2091_s4] sm:$0xff]  ;;  %v243_v8 = vld [vmem:[%s2091_s4 + $0x10] sm:$0xff] }
  0x84   : > { %2626 = vst [vmem:[#allocation15_spill] sm:$0xff] %v2281_v3  ;;  %v1550_v41 = vpack.c.bf16 %v470_v36, %v463_v34  ;;  %1529 = vmatprep.subr.bf16.mxu0 %v2281_v3  ;;  %v2294_v33 = vsub.f32 %v282_v54, %v384_v29  ;;  %v2602_v0 = vand.u32 4294901760, %v2238_v61  ;;  %v2597_v9 = vand.u32 4294901760, %v2249_v56 }
  0x85   : > { %v589_v52 = vand.u32 4294901760, %v588_v59  ;;  %v596_v6 = vand.u32 4294901760, %v595_v13  ;;  %v2300_v7 = vpack.c.bf16 %v336_v44, %v333_v19  ;;  %v2302_v23 = vsub.f32 %v265_v37, %v333_v19 }
  0x86   : > { %1551 = vmatpush3.bf16.msra.mxu1 %v1550_v41  ;;  %v476_v36 = vsub.f32 %v2238_v61, %v2602_v0  ;;  %v483_v54 = vsub.f32 %v2249_v56, %v2597_v9  ;;  %v246_v34 = vadd.f32 %v244_v57, %v242_v11  ;;  %v2598_v29 = vand.u32 4294901760, %v2253_v10 }
  0x87   : > { %2627 = vst [vmem:[#allocation16_spill] sm:$0xff] %v2300_v7  ;;  %v1552_v24 = vpack.c.bf16 %v596_v6, %v589_v52  ;;  %1531 = vmatpush3.bf16.msra.mxu0 %v2300_v7  ;;  %v2599_v59 = vand.u32 4294901760, %v2262_v2  ;;  %v1564_v37 = vpack.c.bf16 %v2123_v32, %v2121_v31  ;;  %v245_v41 = vadd.f32 %v243_v8, %v241_v47 }
  0x88   : > { %v477_v19 = vand.u32 4294901760, %v476_v36  ;;  %v484_v13 = vand.u32 4294901760, %v483_v54  ;;  %v2315_v3 = vand.u32 4294901760, %v246_v34  ;;  %v602_v9 = vsub.f32 %v2253_v10, %v2598_v29 }
  0x89   : > { %1553 = vmatprep.subr.bf16.mxu1 %v1552_v24  ;;  %v609_v52 = vsub.f32 %v2262_v2, %v2599_v59  ;;  %1565 = vmatprep.subr.bf16.mxu0 %v1564_v37  ;;  %v2323_v6 = vand.u32 4294901760, %v245_v41  ;;  %v2600_v11 = vand.u32 4294901760, %v2268_v53  ;;  %v2601_v57 = vand.u32 4294901760, %v2279_v18 }
  0x8a   : > { %2628 = vst [vmem:[#allocation17_spill] sm:$0xff] %v2315_v3  ;;  %v2327_v47 = vsub.f32 %v266_v1, %v336_v44  ;;  %v1554_v8 = vpack.c.bf16 %v484_v13, %v477_v19  ;;  %v2330_v36 = vsub.f32 %v246_v34, %v2315_v3  ;;  %v603_v54 = vand.u32 4294901760, %v602_v9  ;;  %627 = vmatprep.mubr.f32.mxu1 %v2315_v3 }
  0x8b   : > { %v610_v24 = vand.u32 4294901760, %v609_v52  ;;  %v2334_v29 = vsub.f32 %v245_v41, %v2323_v6  ;;  %v490_v37 = vsub.f32 %v2268_v53, %v2600_v11  ;;  %v497_v44 = vsub.f32 %v2279_v18, %v2601_v57 }
  0x8c   : > { %1555 = vmatpush3.bf16.msra.mxu1 %v1554_v8  ;;  %v388_v1 = vand.u32 4294901760, %v2330_v36  ;;  %v2605_v34 = vand.u32 4294901760, %v2283_v35  ;;  %v2606_v9 = vand.u32 4294901760, %v2294_v33  ;;  %v503_v57 = vand.u32 4294901760, %v2302_v23 }
  0x8d   : > { %v1556_v19 = vpack.c.bf16 %v610_v24, %v603_v54  ;;  %v2609_v13 = vand.u32 4294901760, %v2334_v29  ;;  %v491_v41 = vand.u32 4294901760, %v490_v37  ;;  %v498_v52 = vand.u32 4294901760, %v497_v44 }
  0x8e   : > { %v389_v59 = vsub.f32 %v2330_v36, %v388_v1  ;;  %v616_v11 = vsub.f32 %v2283_v35, %v2605_v34  ;;  %v623_v8 = vsub.f32 %v2294_v33, %v2606_v9  ;;  %v1566_v37 = vpack.c.bf16 %v2107_v21, %v2103_v15 }
  0x8f   : > { %1557 = vmatprep.subr.bf16.mxu1 %v1556_v19  ;;  %v395_v54 = vsub.f32 %v2334_v29, %v2609_v13  ;;  %v1558_v24 = vpack.c.bf16 %v498_v52, %v491_v41  ;;  %v510_v44 = vand.u32 4294901760, %v2327_v47  ;;  %v504_v9 = vsub.f32 %v2302_v23, %v503_v57 }
  0x90   : > { %v390_v0 = vand.u32 4294901760, %v389_v59  ;;  %v617_v7 = vand.u32 4294901760, %v616_v11  ;;  %v624_v34 = vand.u32 4294901760, %v623_v8  ;;  %v1568_v19 = vpack.c.bf16 %v2114_v26, %v2112_v25 }
  0x91   : > { %v396_v3 = vand.u32 4294901760, %v395_v54  ;;  %1559 = vmatpush3.bf16.msra.mxu1 %v1558_v24  ;;  %v511_v41 = vsub.f32 %v2327_v47, %v510_v44  ;;  %v505_v13 = vand.u32 4294901760, %v504_v9  ;;  %v1570_v11 = vpack.c.bf16 %v2128_v38, %v2118_v28 }
  0x92   : > { %391 = vmatprep.mubr.f32.mxu0 %v390_v0  ;;  %v1560_v52 = vpack.c.bf16 %v624_v34, %v617_v7  ;;  %v1572_v54 = vpack.c.bf16 %v2135_v43, %v2132_v40  ;;  %v1574_v24 = vpack.c.bf16 %v2158_v58, %v2140_v46  ;;  %v2629_v7 = vand.u32 4294901760, %v2121_v31 }
  0x93   : > { %397 = vmatmul.mubr.f32.vlgmr.msra.gmra.mrb[0].mxu0 %v396_v3  ;;  %v512_v59 = vand.u32 4294901760, %v511_v41  ;;  %v2630_v3 = vand.u32 4294901760, %v2123_v32  ;;  %v2631_v34 = vand.u32 4294901760, %v2103_v15  ;;  %v2632_v9 = vand.u32 4294901760, %v2107_v21 }
  0x94   : > { %1567 = vmatpush3.bf16.msra.mxu0 %v1566_v37  ;;  %1561 = vmatprep.subr.bf16.mxu1 %v1560_v52  ;;  %v2635_v52 = vand.u32 4294901760, %v2118_v28  ;;  %v2637_v31 = vand.u32 4294901760, %v2132_v40  ;;  %v2638_v32 = vand.u32 4294901760, %v2135_v43  ;;  %v2639_v15 = vand.u32 4294901760, %v2140_v46 }
  0x95   : > { %1569 = vmatprep.subr.bf16.mxu0 %v1568_v19  ;;  %v1562_v8 = vpack.c.bf16 %v512_v59, %v505_v13  ;;  %764 = vmatprep.mubr.f32.mxu0 %v2330_v36  ;;  %v1628_v0 = vpack.c.bf16 %v2630_v3, %v2629_v7  ;;  %v1630_v37 = vpack.c.bf16 %v2632_v9, %v2631_v34  ;;  %v2633_v13 = vand.u32 4294901760, %v2112_v25 }
  0x96   : > { %v2634_v19 = vand.u32 4294901760, %v2114_v26  ;;  %v2636_v59 = vand.u32 4294901760, %v2128_v38  ;;  %v1636_v7 = vpack.c.bf16 %v2638_v32, %v2637_v31  ;;  %v2640_v21 = vand.u32 4294901760, %v2158_v58 }
  0x97   : > { %1563 = vmatpush3.bf16.msra.mxu1 %v1562_v8  ;;  %v2641_v25 = vand.u32 4294901760, %v2162_v63  ;;  %v2642_v26 = vand.u32 4294901760, %v2174_v12  ;;  %v2643_v28 = vand.u32 4294901760, %v2178_v17  ;;  %v2644_v38 = vand.u32 4294901760, %v2189_v42 }
  0x98   : > { %v1632_v41 = vpack.c.bf16 %v2634_v19, %v2633_v13  ;;  %v1634_v36 = vpack.c.bf16 %v2636_v59, %v2635_v52  ;;  %v1638_v3 = vpack.c.bf16 %v2640_v21, %v2639_v15  ;;  %1571 = vmatpush3.bf16.msra.mxu0 %v1570_v11  ;;  %1597 = vmatprep.subr.bf16.mxu1 %v2101_v14  ;;  %v2645_v40 = vand.u32 4294901760, %v2193_v50 }
  0x99   : > { %v1640_v34 = vpack.c.bf16 %v2642_v26, %v2641_v25  ;;  %v1642_v8 = vpack.c.bf16 %v2644_v38, %v2643_v28  ;;  %v2646_v43 = vand.u32 4294901760, %v2202_v60  ;;  %v2647_v58 = vand.u32 4294901760, %v2208_v5  ;;  %1573 = vmatprep.subr.bf16.mxu0 %v1572_v54 }
  0x9a   : > { %v2648_v9 = vand.u32 4294901760, %v2219_v30  ;;  %v2649_v19 = vand.u32 4294901760, %v2223_v51  ;;  %v2650_v52 = vand.u32 4294901760, %v2232_v55  ;;  %v1576_v11 = vpack.c.bf16 %v2174_v12, %v2162_v63  ;;  %629 = vmatmul.mubr.f32.vlgmr.msra.gmra.mrb[0].mxu1 %v2323_v6 }
  0x9b   : > { %v1644_v46 = vpack.c.bf16 %v2646_v43, %v2645_v40  ;;  %v2651_v31 = vand.u32 4294901760, %v2238_v61  ;;  %v2652_v32 = vand.u32 4294901760, %v2249_v56  ;;  %v2653_v21 = vand.u32 4294901760, %v2268_v53  ;;  %1599 = vmatpush3.bf16.msra.mxu1 %v2105_v20  ;;  %871 = vmatprep.mubr.f32.mxu1 %v388_v1 }
  0x9c   : > { %v1646_v13 = vpack.c.bf16 %v2648_v9, %v2647_v58  ;;  %v1648_v59 = vpack.c.bf16 %v2650_v52, %v2649_v19  ;;  %v2654_v25 = vand.u32 4294901760, %v2279_v18  ;;  %1575 = vmatpush3.bf16.msra.mxu0 %v1574_v24  ;;  %1601 = vmatprep.subr.bf16.mxu1 %v2109_v22  ;;  %v1578_v63 = vpack.c.bf16 %v2189_v42, %v2178_v17 }
  0x9d   : > { %v1650_v15 = vpack.c.bf16 %v2652_v32, %v2651_v31  ;;  %1577 = vmatprep.subr.bf16.mxu0 %v1576_v11  ;;  %v1580_v12 = vpack.c.bf16 %v2202_v60, %v2193_v50  ;;  %v1582_v54 = vpack.c.bf16 %v2219_v30, %v2208_v5  ;;  %v1584_v1 = vpack.c.bf16 %v2232_v55, %v2223_v51  ;;  %v2655_v5 = vld [vmem:[#allocation12_spill] sm:$0xff]  ;;  %v2656_v30 = vld [vmem:[#allocation13_spill] sm:$0xff]  ;;  %v2658_v51 = vld [vmem:[#allocation15_spill] sm:$0xff] }
  0x9e   : > { %v2430_v26 = vpack.c.bf16 %v2654_v25, %v2653_v21  ;;  %v1586_v17 = vpack.c.bf16 %v2249_v56, %v2238_v61  ;;  %v1588_v42 = vpack.c.bf16 %v2262_v2, %v2253_v10  ;;  %v1590_v50 = vpack.c.bf16 %v2279_v18, %v2268_v53  ;;  %v2657_v53 = vld [vmem:[#allocation14_spill] sm:$0xff]  ;;  %v2659_v55 = vld [vmem:[#allocation17_spill] sm:$0xff]  ;;  %v2660_v56 = vld [vmem:[#allocation16_spill] sm:$0xff] }
  0x9f   : > { %1603 = vmatpush3.bf16.msra.mxu1 %v2116_v27  ;;  %v1592_v60 = vpack.c.bf16 %v2294_v33, %v2283_v35  ;;  %v1594_v61 = vpack.c.bf16 %v2327_v47, %v2302_v23  ;;  %v2661_v18 = vand.u32 4294901760, %v2334_v29 }
  0xa0   : > { %1579 = vmatpush3.bf16.msra.mxu0 %v1578_v63  ;;  %1605 = vmatprep.subr.bf16.mxu1 %v2130_v39 }
  0xa1   : > { %1581 = vmatprep.subr.bf16.mxu0 %v1580_v12 }
  0xa3   : > { %1607 = vmatpush3.bf16.msra.mxu1 %v2138_v45 }
  0xa4   : > { %1583 = vmatpush3.bf16.msra.mxu0 %v1582_v54  ;;  %1609 = vmatprep.subr.bf16.mxu1 %v2160_v62 }
  0xa5   : > { %1585 = vmatprep.subr.bf16.mxu0 %v1584_v1 }
  0xa7   : > { %1611 = vmatpush3.bf16.msra.mxu1 %v2176_v16 }
  0xa8   : > { %1587 = vmatpush3.bf16.msra.mxu0 %v1586_v17  ;;  %1613 = vmatprep.subr.bf16.mxu1 %v2191_v49 }
  0xa9   : > { %1589 = vmatprep.subr.bf16.mxu0 %v1588_v42 }
  0xab   : > { %1615 = vmatpush3.bf16.msra.mxu1 %v2206_v4 }
  0xac   : > { %1591 = vmatpush3.bf16.msra.mxu0 %v1590_v50  ;;  %1617 = vmatprep.subr.bf16.mxu1 %v2221_v48 }
  0xad   : > { %1593 = vmatprep.subr.bf16.mxu0 %v1592_v60 }
  0xaf   : > { %1619 = vmatpush3.bf16.msra.mxu1 %v2655_v5 }
  0xb0   : > { %1595 = vmatpush3.bf16.msra.mxu0 %v1594_v61  ;;  %1621 = vmatprep.subr.bf16.mxu1 %v2656_v30 }
  0xb1   : > { %1629 = vmatprep.subr.bf16.mxu0 %v1628_v0 }
  0xb3   : > { %767 = vmatmul.mubr.f32.vlgmr.msra.gmra.mrb[2].mxu0 %v2334_v29  ;;  %1623 = vmatpush3.bf16.msra.mxu1 %v2657_v53 }
  0xb4   : > { %1631 = vmatpush3.bf16.msra.mxu0 %v1630_v37  ;;  %1625 = vmatprep.subr.bf16.mxu1 %v2658_v51 }
  0xb5   : > { %1633 = vmatprep.subr.bf16.mxu0 %v1632_v41  ;;  %1041 = vmatprep.mubr.f32.mxu0 %v2659_v55 }
  0xb7   : > { %1627 = vmatpush3.bf16.msra.mxu1 %v2660_v56 }
  0xb8   : > { %1635 = vmatpush3.bf16.msra.mxu0 %v1634_v36  ;;  %1661 = vmatprep.subr.bf16.mxu1 %v2101_v14  ;;  %v2662_v14 = vand.u32 4294901760, %v2253_v10 }
  0xb9   : > { %1637 = vmatprep.subr.bf16.mxu0 %v1636_v7 }
  0xba   : > { %875 = vmatmul.mubr.f32.vlgmr.msra.gmra.mrb[2].mxu1 %v2661_v18 }
  0xbb   : > { %1663 = vmatpush3.bf16.msra.mxu1 %v2105_v20  ;;  %1145 = vmatprep.mubr.f32.mxu1 %v2659_v55  ;;  %v2663_v20 = vand.u32 4294901760, %v2262_v2 }
  0xbc   : > { %1639 = vmatpush3.bf16.msra.mxu0 %v1638_v3  ;;  %1665 = vmatprep.subr.bf16.mxu1 %v2109_v22  ;;  %v2664_v22 = vand.u32 4294901760, %v2283_v35 }
  0xbd   : > { %1641 = vmatprep.subr.bf16.mxu0 %v1640_v34  ;;  %v1652_v29 = vpack.c.bf16 %v2663_v20, %v2662_v14 }
  0xbf   : > { %1667 = vmatpush3.bf16.msra.mxu1 %v2116_v27  ;;  %v2665_v27 = vand.u32 4294901760, %v2294_v33 }
  0xc0   : > { %1643 = vmatpush3.bf16.msra.mxu0 %v1642_v8  ;;  %1669 = vmatprep.subr.bf16.mxu1 %v2130_v39 }
  0xc1   : > { %1645 = vmatprep.subr.bf16.mxu0 %v1644_v46  ;;  %v1656_v39 = vpack.c.bf16 %v2665_v27, %v2664_v22 }
  0xc3   : > { %1671 = vmatpush3.bf16.msra.mxu1 %v2138_v45  ;;  %v1658_v45 = vpack.c.bf16 %v510_v44, %v503_v57 }
  0xc4   : > { %1647 = vmatpush3.bf16.msra.mxu0 %v1646_v13  ;;  %1673 = vmatprep.subr.bf16.mxu1 %v2160_v62 }
  0xc5   : > { %1649 = vmatprep.subr.bf16.mxu0 %v1648_v59 }
  0xc7   : > { %1675 = vmatpush3.bf16.msra.mxu1 %v2176_v16  ;;  %v1284_v16 = vld [vmem:[%s2561_s2] ss:$0 sm:$0xff] }
  0xc8   : > { %1651 = vmatpush3.bf16.msra.mxu0 %v1650_v15  ;;  %1677 = vmatprep.subr.bf16.mxu1 %v2191_v49 }
  0xc9   : > { %1653 = vmatprep.subr.bf16.mxu0 %v1652_v29 }
  0xcb   : > { %1679 = vmatpush3.bf16.msra.mxu1 %v2206_v4 }
  0xcc   : > { %1655 = vmatpush3.bf16.msra.mxu0 %v2430_v26  ;;  %1681 = vmatprep.subr.bf16.mxu1 %v2221_v48 }
  0xcd   : > { %1657 = vmatprep.subr.bf16.mxu0 %v1656_v39 }
  0xcf   : > { %1683 = vmatpush3.bf16.msra.mxu1 %v2655_v5 }
  0xd0   : > { %1659 = vmatpush3.bf16.msra.mxu0 %v1658_v45  ;;  %1685 = vmatprep.subr.bf16.mxu1 %v2656_v30 }
  0xd3   : > { %1043 = vmatmul.mubr.f32.vlgmr.msra.gmra.mrb[4].mxu0 %v2323_v6  ;;  %1687 = vmatpush3.bf16.msra.mxu1 %v2657_v53 }
  0xd4   : > { %1689 = vmatprep.subr.bf16.mxu1 %v2658_v51 }
  0xd7   : > { %1691 = vmatpush3.bf16.msra.mxu1 %v2660_v56 }
  0xda   : > { %1147 = vmatmul.mubr.f32.vlgmr.msra.gmra.mrb[4].mxu1 %v2323_v6 }
 0x166   : > { %v1322_v35 = vpop.f32.mrb[0].mxu0 }
 0x167   : > { %v1323_v62 = vpop.f32.mrb[1].mxu0 }
 0x168   : > { %v1324_v10 = vadd.f32 %v1323_v62, %v1322_v35 }
 0x16a   : > { %v399_v49 = vadd.f32 %v1324_v10, %v1284_v16 }
 0x16d   : > { %v1357_v4 = vpop.f32.mrb[0].mxu1 }
 0x16e   : > { %v1358_v23 = vpop.f32.mrb[1].mxu1 }
 0x16f   : > { %v1359_v48 = vadd.f32 %v1358_v23, %v1357_v4 }
 0x171   : > { %v631_v2 = vadd.f32 %v1359_v48, %v399_v49 }
 0x186   : > { %v1392_v33 = vpop.f32.mrb[2].mxu0 }
 0x187   : > { %v1393_v57 = vpop.f32.mrb[3].mxu0 }
 0x188   : > { %v1394_v47 = vadd.f32 %v1393_v57, %v1392_v33 }
 0x18a   : > { %v769_v44 = vadd.f32 %v1394_v47, %v631_v2 }
 0x18d   : > { %v1427_v24 = vpop.f32.mrb[2].mxu1 }
 0x18e   : > { %v1428_v6 = vpop.f32.mrb[3].mxu1 }
 0x18f   : > { %v1429_v0 = vadd.f32 %v1428_v6, %v1427_v24 }
 0x191   : > { %v877_v37 = vadd.f32 %v1429_v0, %v769_v44 }
 0x1a6   : > { %v1462_v41 = vpop.f32.mrb[4].mxu0 }
 0x1a7   : > { %v1463_v36 = vpop.f32.mrb[5].mxu0 }
 0x1a8   : > { %v1464_v7 = vadd.f32 %v1463_v36, %v1462_v41 }
 0x1aa   : > { %v1045_v3 = vadd.f32 %v1464_v7, %v877_v37 }
 0x1ad   : > { %v1497_v34 = vpop.f32.mrb[4].mxu1 }
 0x1ae   : > { %v1498_v28 = vpop.f32.mrb[5].mxu1 }
 0x1af   : > { %v1499_v38 = vadd.f32 %v1498_v28, %v1497_v34 }
 0x1b1   : > { %v1149_v8 = vadd.f32 %v1499_v38, %v1045_v3 }
 0x1b3   : > { %1152 = vst [vmem:[%s233_s10] sm:$0xff] %v1149_v8 }
 0x1b4   : > { %1838 = shalt.err (!%p1835_p5)
}
 0x1b5   : > { %s1839_s19 = scalar_lea.hbm %s2510_s6, 128  ;;  %s1843_s4 = scalar_lea.hbm %s2562_s3, 256 }
 0x1b6   : > { %p1840_p9 = scmp.ne.s32.totalorder %s2510_s6, %s1839_s19  ;;  %p1844_p7 = scmp.lt.u32.totalorder %s2510_s6, %s2562_s3 }
 0x1b7   : > { %p1845_p3 = scmp.lt.u32.totalorder %s1843_s4, %s1839_s19  ;;  %p1847_p4 = scmp.lt.u32.totalorder %s1839_s19, %s2510_s6 }
 0x1b8   : > { %p1841_p1 = pnand %p1840_p9, %p2034_p10 }
 0x1b9   : > { %p1846_p13 = por %p1845_p3, %p1844_p7 }
 0x1ba   : > { %p1842_p2 = pneg %p1841_p1 }
 0x1bb   : > { %p1848_p6 = por %p1847_p4, %p1846_p13 }
 0x1bd   : > { %p1849_p8 = pnand %p1848_p6, %p1842_p2 }
 0x1bf   : > { %1852 = shalt.err (!%p1849_p8)
}
 0x1c0   : > { %1698 = dma.vmem_to_hbm [thread:$0]  (%p2034_p10), %s2512_s11, 128, %s2510_s6, %s1154_s26  }
 0x1c1 PF: > { %s1180_s24 = sand.u32 1, %s1891_s12   ;;  %p2666_p12 = scmp.ne.s32.totalorder %s2613_s23, 0 }
 0x1c2   : > { %p2667_p11 = scmp.ge.s32.totalorder %s1911_s17, 2  ;;  %s1181_s9 = scalar_lea.sflag [#allocation5], %s1180_s24 }
 0x1c4   : > { %p1709_p0 = pnand %p2667_p11, %p2666_p12 }
 0x1c6   : > { %1886 = dma.done.wait (!%p1709_p0), %s1181_s9, 128  }
 0x1c7   : > { %1888 = vsyncadd (!%p1709_p0), %s1181_s9, 4294967168  ;;  %s20_s17 = sadd.s32 1, %s1911_s17   ;;  %s2668_s12 = smov %s1895_s13 }
 0x1c8   : > { %p17_p5 = scmp.ge.s32.totalorder %s20_s17, 4   ;;  %s2669_s13 = smov %s1899_s14 }
 0x1c9   : > { %s2670_s14 = smov %s2043_s5  ;;  %s2671_s15 = smov %s1907_s16 }
 0x1ca   : > { %s2672_s16 = smov %s2674_s28  ;;  %19 = sbr.rel (!%p17_p5) target bundleno = 7 (0x7), region = 89 }
 0x1d1   :  { %1186 = vsyncpa [#allocation4], 1 }
 0x1d2   :  { %1188 = vsyncpa [#allocation4 + $0x1], 1 }
 0x1d3   :  { %1189 = vsyncpa [#allocation7], 1 }
 0x1d4   :  { %1190 = vsyncpa [#allocation5], 1 }
 0x1d5   :  { %1192 = vsyncpa [#allocation5 + $0x1], 1 }

// kernel: tpu_custom_call.1
= control target key start
LH: loop header
LB: loop body
LE: loop exit
PB: predicated region body
PF: predicated region fallthrough
CT: control target
= control target key end

     0   :  { %8 = vsyncpa [#allocation4], 0  ;;  %s2559_s0 = inlined_call_operand.hbm [shape: f32[16,512], index: 0, kind: input, shape index: {}]   ;;  %s2560_s1 = inlined_call_operand.hbm [shape: f32[256,128], index: 1, kind: input, shape index: {}]   ;;  %s2561_s2 = inlined_call_operand.vmem [shape: f32[1,128], index: 2, kind: input, shape index: {}]   ;;  %s2562_s3 = inlined_call_operand.hbm [shape: f32[16,128], index: 3, kind: output, shape index: {}]  }
   0x1   :  { %10 = vsyncpa [#allocation4 + $0x1], 0 }
   0x2   :  { %11 = vsyncpa [#allocation7], 0 }
   0x3   :  { %12 = vsyncpa [#allocation5], 0 }
   0x4   :  { %14 = vsyncpa [#allocation5 + $0x1], 0  ;;  %s1938_s12 = smov 0   ;;  %s1940_s13 = smov 0  }
   0x5   :  { %s1942_s14 = smov 0   ;;  %s1944_s15 = smov 0  }
   0x6   :  { %s1946_s16 = smov 0   ;;  %s1948_s17 = smov 0  }
   0x7 LB: > { %s1271_s18 = sadd.s32 4294967295, %s1911_s17   ;;  %s1272_s19 = sadd.s32 4294967294, %s1911_s17   ;;  %s1911_s17 = sphi %s1948_s17, %s20_s17   ;;  %s1907_s16 = sphi %s1946_s16, %s2672_s16   ;;  %s1903_s15 = sphi %s1944_s15, %s2671_s15   ;;  %s1899_s14 = sphi %s1942_s14, %s2670_s14   ;;  %s1895_s13 = sphi %s1940_s13, %s2669_s13   ;;  %s1891_s12 = sphi %s1938_s12, %s2668_s12  }
   0x8   : > { %p52_p0 = scmp.ne.s32.totalorder %s1895_s13, %s1891_s12  ;;  %p1972_p1 = scmp.eq.s32.totalorder %s1271_s18, 0 }
   0x9   : > { %p1976_p2 = scmp.eq.s32.totalorder %s1271_s18, 1  ;;  %p136_p3 = scmp.eq.s32.totalorder %s1272_s19, 1 }
   0xa   : > { %s2610_s20 = scalar_select %p1972_p1, 1, 0 }
   0xb   : > { %s2611_s21 = scalar_select %p1976_p2, 1, 0 }
   0xc   : > { %p1982_p4 = por %p1972_p1, %p52_p0  ;;  %p1273_p5 = scmp.ge.s32.totalorder %s1911_s17, 1 }
   0xd   : > { %p1987_p6 = por %p136_p3, %p52_p0  ;;  %p143_p7 = scmp.lt.s32.totalorder %s1911_s17, 3 }
   0xe   : > { %s2612_s22 = scalar_select %p1982_p4, 1, 0 }
   0xf   : > { %s2613_s23 = scalar_select %p1987_p6, 1, 0 }
  0x10   : > { %p1992_p8 = pnand %p1273_p5, %p143_p7  ;;  %s1913_s25 = smov [#allocation6]  }
  0x11   : > { %s157_s26 = sshll.u32 %s1913_s25, 4  ;;  %s32_s28 = sadd.s32 1, %s1907_s16  ;;  %s158_s26 = int_to_ptr.vmem [resolvable:$true] %s157_s26 }
  0x12   : > { %s2614_s24 = scalar_select %p1992_p8, 1, 0 }
  0x13   : > { %p1700_p9 = pneg %p1992_p8  ;;  %s1767_s4 = scalar_lea.hbm %s2560_s1, 4096 }
  0x14   : > { %p1768_p12 = scmp.ne.s32.totalorder %s2560_s1, %s1767_s4  ;;  %p1774_p5 = scmp.lt.u32.totalorder %s1767_s4, %s2560_s1 }
  0x15   : > { %p2001_p11 = pnand %p1700_p9, %p1972_p1 }
  0x17   : > { %p1769_p13 = pneg %p2001_p11 }
  0x19   : > { %p1770_p0 = pnand %p1769_p13, %p1768_p12 }
  0x1b   : > { %p1771_p3 = pneg %p1770_p0 }
  0x1d   : > { %p1776_p7 = pnand %p1774_p5, %p1771_p3 }
  0x1f   : > { %1779 = shalt.err (!%p1776_p7)
}
  0x20   : > { %s1780_s9 = scalar_lea.vmem %s158_s26, 4096  ;;  %p1788_p1 = scmp.lt.s32.totalorder %s158_s26, %s158_s26 }
  0x21   : > { %p1781_p9 = scmp.ne.s32.totalorder %s158_s26, %s1780_s9  ;;  %p1789_p4 = scmp.lt.s32.totalorder %s1780_s9, %s1780_s9 }
  0x23   : > { %p1783_p10 = pnand %p1781_p9, %p1769_p13  ;;  %p1790_p8 = por %p1789_p4, %p1788_p1 }
  0x25   : > { %p1784_p6 = pneg %p1783_p10 }
  0x27   : > { %p1791_p2 = pnand %p1790_p8, %p1784_p6 }
  0x29   : > { %1794 = shalt.err (!%p1791_p2)
}
  0x2a   : > { %s1914_s10 = smov 128   ;;  %s1915_s11 = smov 8  }
  0x2b   : > { %1703 = dma.hbm_to_vmem [thread:$0]  (!%p2001_p11), %s2560_s1, 4096, %s158_s26, [#allocation7], %s1914_s10, %s1914_s10, %s1915_s11  }
  0x2c   : > { %p34_p1 = scmp.ge.s32.totalorder %s32_s28, 2  ;;  %s39_s25 = sadd.s32 1, %s1899_s14 }
  0x2d   : > { %p46_p2 = scmp.ne.s32.totalorder %s1899_s14, %s1895_s13  ;;  %p47_p4 = scmp.eq.s32.totalorder %s1911_s17, 0 }
  0x2e   : > { %s2674_s28 = smov (%p34_p1, %s32_s28), 0  ;;  %p2617_p8 = scmp.ne.s32.totalorder %s2611_s21, 0 }
  0x2f   : > { %p2028_p6 = por %p47_p4, %p46_p2  ;;  %s36_s27 = ssub.s32 %s1907_s16, %s2674_s28 }
  0x30   : > { %p2034_p10 = por %p2617_p8, %p46_p2  ;;  %p1713_p12 = scmp.lt.s32.totalorder %s1911_s17, 2 }
  0x31   : > { %p37_p11 = scmp.eq.s32.totalorder %s36_s27, 0  ;;  %s177_s26 = sand.u32 1, %s1899_s14  }
  0x32   : > { %s1277_s4 = sshll.u32 %s177_s26, 5  ;;  %s1289_s6 = sshll.u32 %s1907_s16, 9 }
  0x33   : > { %s2043_s5 = scalar_select %p37_p11, %s1899_s14, %s39_s25  }
  0x34   : > { %s2049_s9 = scalar_lea.hbm %s2559_s0, %s1289_s6  ;;  %s181_s21 = scalar_lea.vmem [#allocation3], %s1277_s4 }
  0x35   : > { %s189_s10 = sshll.u32 %s181_s21, 4  ;;  %p2055_p13 = pnand %p1713_p12, %p2028_p6  ;;  %s2051_s10 = int_to_ptr.vmem [resolvable:$true] %s189_s10 }
  0x36   : > { %s178_s18 = scalar_lea.sflag [#allocation4], %s177_s26  ;;  %s1795_s19 = scalar_lea.hbm %s2049_s9, 512 }
  0x37   : > { %p1796_p0 = scmp.ne.s32.totalorder %s2049_s9, %s1795_s19  ;;  %p1797_p3 = pneg %p2055_p13 }
  0x38   : > { %s1800_s4 = scalar_lea.hbm %s2559_s0, 1024  ;;  %p1801_p9 = scmp.lt.u32.totalorder %s2049_s9, %s2559_s0 }
  0x39   : > { %p1798_p5 = pnand %p1797_p3, %p1796_p0  ;;  %p1802_p1 = scmp.lt.u32.totalorder %s1800_s4, %s1795_s19 }
  0x3a   : > { %p1804_p4 = scmp.lt.u32.totalorder %s1795_s19, %s2049_s9 }
  0x3b   : > { %p1799_p7 = pneg %p1798_p5  ;;  %p1803_p2 = por %p1802_p1, %p1801_p9 }
  0x3d   : > { %p1805_p6 = por %p1804_p4, %p1803_p2 }
  0x3f   : > { %p1806_p8 = pnand %p1805_p6, %p1799_p7 }
  0x41   : > { %1809 = shalt.err (!%p1806_p8)
}
  0x42   : > { %s1810_s26 = scalar_lea.vmem %s2051_s10, 512  ;;  %s1916_s7 = smov [#allocation3]  }
  0x43   : > { %p1811_p12 = scmp.ne.s32.totalorder %s2051_s10, %s1810_s26  ;;  %s1815_s8 = sshll.u32 %s1916_s7, 4  ;;  %s1816_s8 = int_to_ptr.vmem [resolvable:$false] %s1815_s8 }
  0x44   : > { %s1817_s21 = scalar_lea.vmem %s1816_s8, 1024  ;;  %p1818_p5 = scmp.lt.s32.totalorder %s2051_s10, %s1816_s8 }
  0x45   : > { %p1813_p11 = pnand %p1811_p12, %p1797_p3  ;;  %p1819_p9 = scmp.lt.s32.totalorder %s1817_s21, %s1810_s26 }
  0x47   : > { %p1814_p0 = pneg %p1813_p11  ;;  %p1820_p1 = por %p1819_p9, %p1818_p5 }
  0x49   : > { %p1821_p2 = pnand %p1820_p1, %p1814_p0 }
  0x4b   : > { %1824 = shalt.err (!%p1821_p2)
}
  0x4c   : > { %1707 = dma.hbm_to_vmem [thread:$0]  (!%p2055_p13), %s2049_s9, 512, %s2051_s10, %s178_s18  }
  0x4d   : > { %p2620_p7 = scmp.ne.s32.totalorder %s2614_s24, 0 }
  0x4f   : > { %198 = sbr.rel (%p2620_p7) target bundleno = 449 (0x1c1), region = 32 }
  0x56   : > { %s2087_s19 = sand.u32 1, %s1895_s13   ;;  %p2621_p3 = scmp.ne.s32.totalorder %s2612_s22, 0 }
  0x57   : > { %s1281_s25 = sshll.u32 %s2087_s19, 5  ;;  %s201_s27 = scalar_lea.sflag [#allocation4], %s2087_s19 }
  0x58   : > { %s2091_s4 = scalar_lea.vmem [#allocation3], %s1281_s25 }
  0x59   : > { %1878 = dma.done.wait (%p2621_p3), %s201_s27, 512  }
  0x5a   : > { %1880 = vsyncadd (%p2621_p3), %s201_s27, 4294966784  ;;  %p2622_p13 = scmp.ne.s32.totalorder %s2610_s20, 0 }
  0x5c   : > { %1882 = dma.done.wait (%p2622_p13), [#allocation7], 4096  }
  0x5d   : > { %1884 = vsyncadd (%p2622_p13), [#allocation7], 4294963200  ;;  %v267_v0 = vld [vmem:[#allocation6 + $0x80] sm:$0xff]  ;;  %v268_v1 = vld [vmem:[#allocation6 + $0x88] sm:$0xff]  ;;  %s1283_s24 = sshll.u32 %s2087_s19, 3  ;;  %s1286_s9 = sshll.u32 %s1903_s15, 7 }
  0x5e   : > { %v251_v2 = vld [vmem:[#allocation6] sm:$0xff]  ;;  %v339_v3 = vand.u32 4294901760, %v267_v0  ;;  %v342_v4 = vand.u32 4294901760, %v268_v1  ;;  %v252_v5 = vld [vmem:[#allocation6 + $0x8] sm:$0xff]  ;;  %v269_v7 = vld [vmem:[#allocation6 + $0x90] sm:$0xff]  ;;  %s233_s10 = scalar_lea.vmem [#allocation8], %s1283_s24  ;;  %s2510_s6 = scalar_lea.hbm %s2562_s3, %s1286_s9 }
  0x5f   : > { %v291_v6 = vand.u32 4294901760, %v251_v2  ;;  %v270_v8 = vld [vmem:[#allocation6 + $0x98] sm:$0xff]  ;;  %v294_v9 = vand.u32 4294901760, %v252_v5  ;;  %v345_v10 = vand.u32 4294901760, %v269_v7  ;;  %v253_v12 = vld [vmem:[#allocation6 + $0x10] sm:$0xff]  ;;  %v271_v18 = vld [vmem:[#allocation6 + $0xa0] sm:$0xff] }
  0x60   : > { %v348_v11 = vand.u32 4294901760, %v270_v8  ;;  %v254_v13 = vld [vmem:[#allocation6 + $0x18] sm:$0xff]  ;;  %v2101_v14 = vpack.c.bf16 %v342_v4, %v339_v3  ;;  %v297_v16 = vand.u32 4294901760, %v253_v12  ;;  %v272_v19 = vld [vmem:[#allocation6 + $0xa8] sm:$0xff]  ;;  %v255_v23 = vld [vmem:[#allocation6 + $0x20] sm:$0xff]  ;;  %v351_v29 = vand.u32 4294901760, %v271_v18 }
  0x61   : > { %v2103_v15 = vsub.f32 %v251_v2, %v291_v6  ;;  %v300_v17 = vand.u32 4294901760, %v254_v13  ;;  %v2105_v20 = vpack.c.bf16 %v294_v9, %v291_v6  ;;  %v2107_v21 = vsub.f32 %v252_v5, %v294_v9  ;;  %v256_v24 = vld [vmem:[#allocation6 + $0x28] sm:$0xff]  ;;  %v273_v37 = vld [vmem:[#allocation6 + $0xb0] sm:$0xff]  ;;  %v274_v42 = vld [vmem:[#allocation6 + $0xb8] sm:$0xff]  ;;  %s1168_s11 = sshll.u32 %s233_s10, 4  ;;  %s1154_s26 = scalar_lea.sflag [#allocation5], %s2087_s19  ;;  %s2512_s11 = int_to_ptr.vmem [resolvable:$true] %s1168_s11 }
  0x62   : > { %v2109_v22 = vpack.c.bf16 %v348_v11, %v345_v10  ;;  %1501 = vmatprep.subr.bf16.mxu0 %v2101_v14  ;;  %v2112_v25 = vsub.f32 %v269_v7, %v345_v10  ;;  %v2114_v26 = vsub.f32 %v270_v8, %v348_v11  ;;  %v2118_v28 = vsub.f32 %v253_v12, %v297_v16  ;;  %v257_v55 = vld [vmem:[#allocation6 + $0x30] sm:$0xff]  ;;  %v258_v56 = vld [vmem:[#allocation6 + $0x38] sm:$0xff]  ;;  %v275_v5 = vld [vmem:[#allocation6 + $0xc0] sm:$0xff]  ;;  %s1825_s7 = scalar_lea.vmem %s2512_s11, 128  ;;  %s1917_s15 = smov [#allocation8]  }
  0x63   : > { %v2116_v27 = vpack.c.bf16 %v300_v17, %v297_v16  ;;  %1503 = vmatpush3.bf16.msra.mxu0 %v2105_v20  ;;  %v354_v30 = vand.u32 4294901760, %v272_v19  ;;  %v2121_v31 = vsub.f32 %v267_v0, %v339_v3  ;;  %v2123_v32 = vsub.f32 %v268_v1, %v342_v4  ;;  %v276_v6 = vld [vmem:[#allocation6 + $0xc8] sm:$0xff]  ;;  %v259_v11 = vld [vmem:[#allocation6 + $0x40] sm:$0xff]  ;;  %p1826_p4 = scmp.ne.s32.totalorder %s2512_s11, %s1825_s7  ;;  %s1829_s8 = sshll.u32 %s1917_s15, 4  ;;  %s1830_s8 = int_to_ptr.vmem [resolvable:$false] %s1829_s8 }
  0x64   : > { %1505 = vmatprep.subr.bf16.mxu0 %v2109_v22  ;;  %v303_v33 = vand.u32 4294901760, %v255_v23  ;;  %v306_v34 = vand.u32 4294901760, %v256_v24  ;;  %v2584_v35 = vand.u32 4294901760, %v2103_v15  ;;  %v2582_v36 = vand.u32 4294901760, %v2107_v21  ;;  %s1831_s21 = scalar_lea.vmem %s1830_s8, 256  ;;  %p1832_p12 = scmp.lt.s32.totalorder %s2512_s11, %s1830_s8 }
  0x65   : > { %v2128_v38 = vsub.f32 %v254_v13, %v300_v17  ;;  %v2130_v39 = vpack.c.bf16 %v354_v30, %v351_v29  ;;  %v2132_v40 = vsub.f32 %v271_v18, %v351_v29  ;;  %v2586_v41 = vand.u32 4294901760, %v2121_v31  ;;  %v260_v29 = vld [vmem:[#allocation6 + $0x48] sm:$0xff]  ;;  %p1827_p6 = pnand %p1826_p4, %p2034_p10  ;;  %p1833_p11 = scmp.lt.s32.totalorder %s1831_s21, %s1825_s7 }
  0x66   : > { %v2135_v43 = vsub.f32 %v272_v19, %v354_v30  ;;  %v2585_v44 = vand.u32 4294901760, %v2123_v32  ;;  %v2138_v45 = vpack.c.bf16 %v306_v34, %v303_v33  ;;  %v2140_v46 = vsub.f32 %v255_v23, %v303_v33 }
  0x67   : > { %1507 = vmatpush3.bf16.msra.mxu0 %v2116_v27  ;;  %v518_v47 = vsub.f32 %v2121_v31, %v2586_v41  ;;  %v406_v48 = vsub.f32 %v2103_v15, %v2584_v35  ;;  %v413_v49 = vsub.f32 %v2107_v21, %v2582_v36  ;;  %v357_v50 = vand.u32 4294901760, %v273_v37  ;;  %p1828_p8 = pneg %p1827_p6  ;;  %p1834_p0 = por %p1833_p11, %p1832_p12 }
  0x68   : > { %1509 = vmatprep.subr.bf16.mxu0 %v2130_v39  ;;  %v525_v51 = vsub.f32 %v2123_v32, %v2585_v44  ;;  %v360_v52 = vand.u32 4294901760, %v274_v42  ;;  %v2579_v53 = vand.u32 4294901760, %v2112_v25  ;;  %v2577_v54 = vand.u32 4294901760, %v2114_v26 }
  0x69   : > { %v519_v57 = vand.u32 4294901760, %v518_v47  ;;  %v2158_v58 = vsub.f32 %v256_v24, %v306_v34  ;;  %v407_v59 = vand.u32 4294901760, %v406_v48  ;;  %v414_v60 = vand.u32 4294901760, %v413_v49  ;;  %p1835_p5 = pnand %p1834_p0, %p1828_p8 }
  0x6a   : > { %v526_v61 = vand.u32 4294901760, %v525_v51  ;;  %v2160_v62 = vpack.c.bf16 %v360_v52, %v357_v50  ;;  %v2162_v63 = vsub.f32 %v273_v37, %v357_v50  ;;  %v532_v0 = vsub.f32 %v2112_v25, %v2579_v53 }
  0x6b   : > { %1511 = vmatpush3.bf16.msra.mxu0 %v2138_v45  ;;  %v1534_v1 = vpack.c.bf16 %v414_v60, %v407_v59  ;;  %v539_v2 = vsub.f32 %v2114_v26, %v2577_v54  ;;  %v309_v3 = vand.u32 4294901760, %v257_v55  ;;  %v312_v4 = vand.u32 4294901760, %v258_v56  ;;  %v278_v59 = vld [vmem:[#allocation6 + $0xd8] sm:$0xff] }
  0x6c   : > { %v1532_v7 = vpack.c.bf16 %v526_v61, %v519_v57  ;;  %1513 = vmatprep.subr.bf16.mxu0 %v2160_v62  ;;  %v533_v8 = vand.u32 4294901760, %v532_v0  ;;  %v2576_v9 = vand.u32 4294901760, %v2118_v28  ;;  %v2574_v10 = vand.u32 4294901760, %v2128_v38  ;;  %v277_v57 = vld [vmem:[#allocation6 + $0xd0] sm:$0xff]  ;;  %v282_v54 = vld [vmem:[#allocation6 + $0xf8] sm:$0xff] }
  0x6d   : > { %v2174_v12 = vsub.f32 %v274_v42, %v360_v52  ;;  %v540_v13 = vand.u32 4294901760, %v539_v2  ;;  %v2176_v16 = vpack.c.bf16 %v312_v4, %v309_v3  ;;  %v2178_v17 = vsub.f32 %v257_v55, %v309_v3 }
  0x6e   : > { %1533 = vmatprep.subr.bf16.mxu1 %v1532_v7  ;;  %v420_v18 = vsub.f32 %v2118_v28, %v2576_v9  ;;  %v427_v19 = vsub.f32 %v2128_v38, %v2574_v10  ;;  %v363_v23 = vand.u32 4294901760, %v275_v5  ;;  %v366_v24 = vand.u32 4294901760, %v276_v6  ;;  %v281_v9 = vld [vmem:[#allocation6 + $0xf0] sm:$0xff] }
  0x6f   : > { %1535 = vmatpush3.bf16.msra.mxu1 %v1534_v1  ;;  %v1536_v30 = vpack.c.bf16 %v540_v13, %v533_v8  ;;  %1515 = vmatpush3.bf16.msra.mxu0 %v2176_v16  ;;  %v2572_v33 = vand.u32 4294901760, %v2132_v40  ;;  %v2571_v34 = vand.u32 4294901760, %v2135_v43  ;;  %v315_v37 = vand.u32 4294901760, %v259_v11  ;;  %v261_v1 = vld [vmem:[#allocation6 + $0x50] sm:$0xff] }
  0x70   : > { %v2189_v42 = vsub.f32 %v258_v56, %v312_v4  ;;  %v421_v47 = vand.u32 4294901760, %v420_v18  ;;  %v428_v48 = vand.u32 4294901760, %v427_v19  ;;  %v2191_v49 = vpack.c.bf16 %v366_v24, %v363_v23  ;;  %v262_v18 = vld [vmem:[#allocation6 + $0x58] sm:$0xff] }
  0x71   : > { %1537 = vmatprep.subr.bf16.mxu1 %v1536_v30  ;;  %v2193_v50 = vsub.f32 %v275_v5, %v363_v23  ;;  %v546_v51 = vsub.f32 %v2132_v40, %v2572_v33  ;;  %v553_v52 = vsub.f32 %v2135_v43, %v2571_v34  ;;  %v318_v55 = vand.u32 4294901760, %v260_v29 }
  0x72   : > { %v1538_v56 = vpack.c.bf16 %v428_v48, %v421_v47  ;;  %1517 = vmatprep.subr.bf16.mxu0 %v2191_v49  ;;  %v2202_v60 = vsub.f32 %v276_v6, %v366_v24  ;;  %v2569_v61 = vand.u32 4294901760, %v2140_v46  ;;  %v2567_v0 = vand.u32 4294901760, %v2158_v58 }
  0x73   : > { %v547_v2 = vand.u32 4294901760, %v546_v51  ;;  %v554_v3 = vand.u32 4294901760, %v553_v52  ;;  %v2206_v4 = vpack.c.bf16 %v318_v55, %v315_v37  ;;  %v2208_v5 = vsub.f32 %v259_v11, %v315_v37 }
  0x74   : > { %1539 = vmatpush3.bf16.msra.mxu1 %v1538_v56  ;;  %v434_v7 = vsub.f32 %v2140_v46, %v2569_v61  ;;  %v441_v6 = vsub.f32 %v2158_v58, %v2567_v0  ;;  %v369_v8 = vand.u32 4294901760, %v277_v57  ;;  %v372_v13 = vand.u32 4294901760, %v278_v59  ;;  %v280_v0 = vld [vmem:[#allocation6 + $0xe8] sm:$0xff] }
  0x75   : > { %v1540_v19 = vpack.c.bf16 %v554_v3, %v547_v2  ;;  %1519 = vmatpush3.bf16.msra.mxu0 %v2206_v4  ;;  %v2568_v23 = vand.u32 4294901760, %v2162_v63  ;;  %v2570_v11 = vand.u32 4294901760, %v2174_v12  ;;  %v321_v24 = vand.u32 4294901760, %v261_v1  ;;  %v279_v3 = vld [vmem:[#allocation6 + $0xe0] sm:$0xff] }
  0x76   : > { %v2219_v30 = vsub.f32 %v260_v29, %v318_v55  ;;  %v435_v37 = vand.u32 4294901760, %v434_v7  ;;  %v442_v47 = vand.u32 4294901760, %v441_v6  ;;  %v2221_v48 = vpack.c.bf16 %v372_v13, %v369_v8  ;;  %v263_v6 = vld [vmem:[#allocation6 + $0x60] sm:$0xff] }
  0x77   : > { %1541 = vmatprep.subr.bf16.mxu1 %v1540_v19  ;;  %v2223_v51 = vsub.f32 %v277_v57, %v369_v8  ;;  %v560_v52 = vsub.f32 %v2162_v63, %v2568_v23  ;;  %v567_v56 = vsub.f32 %v2174_v12, %v2570_v11  ;;  %v324_v2 = vand.u32 4294901760, %v262_v18  ;;  %v264_v11 = vld [vmem:[#allocation6 + $0x68] sm:$0xff] }
  0x78   : > { %v1542_v29 = vpack.c.bf16 %v442_v47, %v435_v37  ;;  %1521 = vmatprep.subr.bf16.mxu0 %v2221_v48  ;;  %v2232_v55 = vsub.f32 %v278_v59, %v372_v13  ;;  %v2573_v7 = vand.u32 4294901760, %v2178_v17  ;;  %v2575_v57 = vand.u32 4294901760, %v2189_v42 }
  0x79   : > { %v561_v8 = vand.u32 4294901760, %v560_v52  ;;  %v568_v19 = vand.u32 4294901760, %v567_v56  ;;  %v2236_v23 = vpack.c.bf16 %v324_v2, %v321_v24  ;;  %v2238_v61 = vsub.f32 %v261_v1, %v321_v24 }
  0x7a   : > { %1543 = vmatpush3.bf16.msra.mxu1 %v1542_v29  ;;  %v448_v37 = vsub.f32 %v2178_v17, %v2573_v7  ;;  %v455_v59 = vsub.f32 %v2189_v42, %v2575_v57  ;;  %v375_v13 = vand.u32 4294901760, %v279_v3  ;;  %v378_v47 = vand.u32 4294901760, %v280_v0 }
  0x7b   : > { %2623 = vst [vmem:[#allocation12_spill] sm:$0xff] %v2236_v23  ;;  %v1544_v34 = vpack.c.bf16 %v568_v19, %v561_v8  ;;  %1523 = vmatpush3.bf16.msra.mxu0 %v2236_v23  ;;  %v2578_v52 = vand.u32 4294901760, %v2193_v50  ;;  %v2580_v1 = vand.u32 4294901760, %v2202_v60  ;;  %v327_v24 = vand.u32 4294901760, %v263_v6 }
  0x7c   : > { %v2249_v56 = vsub.f32 %v262_v18, %v324_v2  ;;  %v449_v29 = vand.u32 4294901760, %v448_v37  ;;  %v456_v33 = vand.u32 4294901760, %v455_v59  ;;  %v2251_v7 = vpack.c.bf16 %v378_v47, %v375_v13  ;;  %v265_v37 = vld [vmem:[#allocation6 + $0x70] sm:$0xff] }
  0x7d   : > { %1545 = vmatprep.subr.bf16.mxu1 %v1544_v34  ;;  %v2253_v10 = vsub.f32 %v279_v3, %v375_v13  ;;  %v574_v8 = vsub.f32 %v2193_v50, %v2578_v52  ;;  %v581_v19 = vsub.f32 %v2202_v60, %v2580_v1  ;;  %v330_v57 = vand.u32 4294901760, %v264_v11  ;;  %v266_v1 = vld [vmem:[#allocation6 + $0x78] sm:$0xff] }
  0x7e   : > { %2624 = vst [vmem:[#allocation13_spill] sm:$0xff] %v2251_v7  ;;  %v1546_v18 = vpack.c.bf16 %v456_v33, %v449_v29  ;;  %1525 = vmatprep.subr.bf16.mxu0 %v2251_v7  ;;  %v2262_v2 = vsub.f32 %v280_v0, %v378_v47  ;;  %v2581_v34 = vand.u32 4294901760, %v2208_v5  ;;  %v2583_v3 = vand.u32 4294901760, %v2219_v30 }
  0x7f   : > { %v575_v59 = vand.u32 4294901760, %v574_v8  ;;  %v582_v13 = vand.u32 4294901760, %v581_v19  ;;  %v2266_v52 = vpack.c.bf16 %v330_v57, %v327_v24  ;;  %v2268_v53 = vsub.f32 %v263_v6, %v327_v24 }
  0x80   : > { %1547 = vmatpush3.bf16.msra.mxu1 %v1546_v18  ;;  %v462_v33 = vsub.f32 %v2208_v5, %v2581_v34  ;;  %v469_v0 = vsub.f32 %v2219_v30, %v2583_v3  ;;  %v381_v47 = vand.u32 4294901760, %v281_v9  ;;  %v384_v29 = vand.u32 4294901760, %v282_v54 }
  0x81   : > { %2625 = vst [vmem:[#allocation14_spill] sm:$0xff] %v2266_v52  ;;  %v1548_v8 = vpack.c.bf16 %v582_v13, %v575_v59  ;;  %1527 = vmatpush3.bf16.msra.mxu0 %v2266_v52  ;;  %v2589_v6 = vand.u32 4294901760, %v2223_v51  ;;  %v2594_v24 = vand.u32 4294901760, %v2232_v55  ;;  %v333_v19 = vand.u32 4294901760, %v265_v37 }
  0x82   : > { %v2279_v18 = vsub.f32 %v264_v11, %v330_v57  ;;  %v463_v34 = vand.u32 4294901760, %v462_v33  ;;  %v470_v36 = vand.u32 4294901760, %v469_v0  ;;  %v2281_v3 = vpack.c.bf16 %v384_v29, %v381_v47  ;;  %v242_v11 = vld [vmem:[%s2091_s4 + $0x8] sm:$0xff]  ;;  %v244_v57 = vld [vmem:[%s2091_s4 + $0x18] sm:$0xff] }
  0x83   : > { %1549 = vmatprep.subr.bf16.mxu1 %v1548_v8  ;;  %v2283_v35 = vsub.f32 %v281_v9, %v381_v47  ;;  %v588_v59 = vsub.f32 %v2223_v51, %v2589_v6  ;;  %v595_v13 = vsub.f32 %v2232_v55, %v2594_v24  ;;  %v336_v44 = vand.u32 4294901760, %v266_v1  ;;  %v241_v47 = vld [vmem:[%s2091_s4] sm:$0xff]  ;;  %v243_v8 = vld [vmem:[%s2091_s4 + $0x10] sm:$0xff] }
  0x84   : > { %2626 = vst [vmem:[#allocation15_spill] sm:$0xff] %v2281_v3  ;;  %v1550_v41 = vpack.c.bf16 %v470_v36, %v463_v34  ;;  %1529 = vmatprep.subr.bf16.mxu0 %v2281_v3  ;;  %v2294_v33 = vsub.f32 %v282_v54, %v384_v29  ;;  %v2602_v0 = vand.u32 4294901760, %v2238_v61  ;;  %v2597_v9 = vand.u32 4294901760, %v2249_v56 }
  0x85   : > { %v589_v52 = vand.u32 4294901760, %v588_v59  ;;  %v596_v6 = vand.u32 4294901760, %v595_v13  ;;  %v2300_v7 = vpack.c.bf16 %v336_v44, %v333_v19  ;;  %v2302_v23 = vsub.f32 %v265_v37, %v333_v19 }
  0x86   : > { %1551 = vmatpush3.bf16.msra.mxu1 %v1550_v41  ;;  %v476_v36 = vsub.f32 %v2238_v61, %v2602_v0  ;;  %v483_v54 = vsub.f32 %v2249_v56, %v2597_v9  ;;  %v246_v34 = vadd.f32 %v244_v57, %v242_v11  ;;  %v2598_v29 = vand.u32 4294901760, %v2253_v10 }
  0x87   : > { %2627 = vst [vmem:[#allocation16_spill] sm:$0xff] %v2300_v7  ;;  %v1552_v24 = vpack.c.bf16 %v596_v6, %v589_v52  ;;  %1531 = vmatpush3.bf16.msra.mxu0 %v2300_v7  ;;  %v2599_v59 = vand.u32 4294901760, %v2262_v2  ;;  %v1564_v37 = vpack.c.bf16 %v2123_v32, %v2121_v31  ;;  %v245_v41 = vadd.f32 %v243_v8, %v241_v47 }
  0x88   : > { %v477_v19 = vand.u32 4294901760, %v476_v36  ;;  %v484_v13 = vand.u32 4294901760, %v483_v54  ;;  %v2315_v3 = vand.u32 4294901760, %v246_v34  ;;  %v602_v9 = vsub.f32 %v2253_v10, %v2598_v29 }
  0x89   : > { %1553 = vmatprep.subr.bf16.mxu1 %v1552_v24  ;;  %v609_v52 = vsub.f32 %v2262_v2, %v2599_v59  ;;  %1565 = vmatprep.subr.bf16.mxu0 %v1564_v37  ;;  %v2323_v6 = vand.u32 4294901760, %v245_v41  ;;  %v2600_v11 = vand.u32 4294901760, %v2268_v53  ;;  %v2601_v57 = vand.u32 4294901760, %v2279_v18 }
  0x8a   : > { %2628 = vst [vmem:[#allocation17_spill] sm:$0xff] %v2315_v3  ;;  %v2327_v47 = vsub.f32 %v266_v1, %v336_v44  ;;  %v1554_v8 = vpack.c.bf16 %v484_v13, %v477_v19  ;;  %v2330_v36 = vsub.f32 %v246_v34, %v2315_v3  ;;  %v603_v54 = vand.u32 4294901760, %v602_v9  ;;  %627 = vmatprep.mubr.f32.mxu1 %v2315_v3 }
  0x8b   : > { %v610_v24 = vand.u32 4294901760, %v609_v52  ;;  %v2334_v29 = vsub.f32 %v245_v41, %v2323_v6  ;;  %v490_v37 = vsub.f32 %v2268_v53, %v2600_v11  ;;  %v497_v44 = vsub.f32 %v2279_v18, %v2601_v57 }
  0x8c   : > { %1555 = vmatpush3.bf16.msra.mxu1 %v1554_v8  ;;  %v388_v1 = vand.u32 4294901760, %v2330_v36  ;;  %v2605_v34 = vand.u32 4294901760, %v2283_v35  ;;  %v2606_v9 = vand.u32 4294901760, %v2294_v33  ;;  %v503_v57 = vand.u32 4294901760, %v2302_v23 }
  0x8d   : > { %v1556_v19 = vpack.c.bf16 %v610_v24, %v603_v54  ;;  %v2609_v13 = vand.u32 4294901760, %v2334_v29  ;;  %v491_v41 = vand.u32 4294901760, %v490_v37  ;;  %v498_v52 = vand.u32 4294901760, %v497_v44 }
  0x8e   : > { %v389_v59 = vsub.f32 %v2330_v36, %v388_v1  ;;  %v616_v11 = vsub.f32 %v2283_v35, %v2605_v34  ;;  %v623_v8 = vsub.f32 %v2294_v33, %v2606_v9  ;;  %v1566_v37 = vpack.c.bf16 %v2107_v21, %v2103_v15 }
  0x8f   : > { %1557 = vmatprep.subr.bf16.mxu1 %v1556_v19  ;;  %v395_v54 = vsub.f32 %v2334_v29, %v2609_v13  ;;  %v1558_v24 = vpack.c.bf16 %v498_v52, %v491_v41  ;;  %v510_v44 = vand.u32 4294901760, %v2327_v47  ;;  %v504_v9 = vsub.f32 %v2302_v23, %v503_v57 }
  0x90   : > { %v390_v0 = vand.u32 4294901760, %v389_v59  ;;  %v617_v7 = vand.u32 4294901760, %v616_v11  ;;  %v624_v34 = vand.u32 4294901760, %v623_v8  ;;  %v1568_v19 = vpack.c.bf16 %v2114_v26, %v2112_v25 }
  0x91   : > { %v396_v3 = vand.u32 4294901760, %v395_v54  ;;  %1559 = vmatpush3.bf16.msra.mxu1 %v1558_v24  ;;  %v511_v41 = vsub.f32 %v2327_v47, %v510_v44  ;;  %v505_v13 = vand.u32 4294901760, %v504_v9  ;;  %v1570_v11 = vpack.c.bf16 %v2128_v38, %v2118_v28 }
  0x92   : > { %391 = vmatprep.mubr.f32.mxu0 %v390_v0  ;;  %v1560_v52 = vpack.c.bf16 %v624_v34, %v617_v7  ;;  %v1572_v54 = vpack.c.bf16 %v2135_v43, %v2132_v40  ;;  %v1574_v24 = vpack.c.bf16 %v2158_v58, %v2140_v46  ;;  %v2629_v7 = vand.u32 4294901760, %v2121_v31 }
  0x93   : > { %397 = vmatmul.mubr.f32.vlgmr.msra.gmra.mrb[0].mxu0 %v396_v3  ;;  %v512_v59 = vand.u32 4294901760, %v511_v41  ;;  %v2630_v3 = vand.u32 4294901760, %v2123_v32  ;;  %v2631_v34 = vand.u32 4294901760, %v2103_v15  ;;  %v2632_v9 = vand.u32 4294901760, %v2107_v21 }
  0x94   : > { %1567 = vmatpush3.bf16.msra.mxu0 %v1566_v37  ;;  %1561 = vmatprep.subr.bf16.mxu1 %v1560_v52  ;;  %v2635_v52 = vand.u32 4294901760, %v2118_v28  ;;  %v2637_v31 = vand.u32 4294901760, %v2132_v40  ;;  %v2638_v32 = vand.u32 4294901760, %v2135_v43  ;;  %v2639_v15 = vand.u32 4294901760, %v2140_v46 }
  0x95   : > { %1569 = vmatprep.subr.bf16.mxu0 %v1568_v19  ;;  %v1562_v8 = vpack.c.bf16 %v512_v59, %v505_v13  ;;  %764 = vmatprep.mubr.f32.mxu0 %v2330_v36  ;;  %v1628_v0 = vpack.c.bf16 %v2630_v3, %v2629_v7  ;;  %v1630_v37 = vpack.c.bf16 %v2632_v9, %v2631_v34  ;;  %v2633_v13 = vand.u32 4294901760, %v2112_v25 }
  0x96   : > { %v2634_v19 = vand.u32 4294901760, %v2114_v26  ;;  %v2636_v59 = vand.u32 4294901760, %v2128_v38  ;;  %v1636_v7 = vpack.c.bf16 %v2638_v32, %v2637_v31  ;;  %v2640_v21 = vand.u32 4294901760, %v2158_v58 }
  0x97   : > { %1563 = vmatpush3.bf16.msra.mxu1 %v1562_v8  ;;  %v2641_v25 = vand.u32 4294901760, %v2162_v63  ;;  %v2642_v26 = vand.u32 4294901760, %v2174_v12  ;;  %v2643_v28 = vand.u32 4294901760, %v2178_v17  ;;  %v2644_v38 = vand.u32 4294901760, %v2189_v42 }
  0x98   : > { %v1632_v41 = vpack.c.bf16 %v2634_v19, %v2633_v13  ;;  %v1634_v36 = vpack.c.bf16 %v2636_v59, %v2635_v52  ;;  %v1638_v3 = vpack.c.bf16 %v2640_v21, %v2639_v15  ;;  %1571 = vmatpush3.bf16.msra.mxu0 %v1570_v11  ;;  %1597 = vmatprep.subr.bf16.mxu1 %v2101_v14  ;;  %v2645_v40 = vand.u32 4294901760, %v2193_v50 }
  0x99   : > { %v1640_v34 = vpack.c.bf16 %v2642_v26, %v2641_v25  ;;  %v1642_v8 = vpack.c.bf16 %v2644_v38, %v2643_v28  ;;  %v2646_v43 = vand.u32 4294901760, %v2202_v60  ;;  %v2647_v58 = vand.u32 4294901760, %v2208_v5  ;;  %1573 = vmatprep.subr.bf16.mxu0 %v1572_v54 }
  0x9a   : > { %v2648_v9 = vand.u32 4294901760, %v2219_v30  ;;  %v2649_v19 = vand.u32 4294901760, %v2223_v51  ;;  %v2650_v52 = vand.u32 4294901760, %v2232_v55  ;;  %v1576_v11 = vpack.c.bf16 %v2174_v12, %v2162_v63  ;;  %629 = vmatmul.mubr.f32.vlgmr.msra.gmra.mrb[0].mxu1 %v2323_v6 }
  0x9b   : > { %v1644_v46 = vpack.c.bf16 %v2646_v43, %v2645_v40  ;;  %v2651_v31 = vand.u32 4294901760, %v2238_v61  ;;  %v2652_v32 = vand.u32 4294901760, %v2249_v56  ;;  %v2653_v21 = vand.u32 4294901760, %v2268_v53  ;;  %1599 = vmatpush3.bf16.msra.mxu1 %v2105_v20  ;;  %871 = vmatprep.mubr.f32.mxu1 %v388_v1 }
  0x9c   : > { %v1646_v13 = vpack.c.bf16 %v2648_v9, %v2647_v58  ;;  %v1648_v59 = vpack.c.bf16 %v2650_v52, %v2649_v19  ;;  %v2654_v25 = vand.u32 4294901760, %v2279_v18  ;;  %1575 = vmatpush3.bf16.msra.mxu0 %v1574_v24  ;;  %1601 = vmatprep.subr.bf16.mxu1 %v2109_v22  ;;  %v1578_v63 = vpack.c.bf16 %v2189_v42, %v2178_v17 }
  0x9d   : > { %v1650_v15 = vpack.c.bf16 %v2652_v32, %v2651_v31  ;;  %1577 = vmatprep.subr.bf16.mxu0 %v1576_v11  ;;  %v1580_v12 = vpack.c.bf16 %v2202_v60, %v2193_v50  ;;  %v1582_v54 = vpack.c.bf16 %v2219_v30, %v2208_v5  ;;  %v1584_v1 = vpack.c.bf16 %v2232_v55, %v2223_v51  ;;  %v2655_v5 = vld [vmem:[#allocation12_spill] sm:$0xff]  ;;  %v2656_v30 = vld [vmem:[#allocation13_spill] sm:$0xff]  ;;  %v2658_v51 = vld [vmem:[#allocation15_spill] sm:$0xff] }
  0x9e   : > { %v2430_v26 = vpack.c.bf16 %v2654_v25, %v2653_v21  ;;  %v1586_v17 = vpack.c.bf16 %v2249_v56, %v2238_v61  ;;  %v1588_v42 = vpack.c.bf16 %v2262_v2, %v2253_v10  ;;  %v1590_v50 = vpack.c.bf16 %v2279_v18, %v2268_v53  ;;  %v2657_v53 = vld [vmem:[#allocation14_spill] sm:$0xff]  ;;  %v2659_v55 = vld [vmem:[#allocation17_spill] sm:$0xff]  ;;  %v2660_v56 = vld [vmem:[#allocation16_spill] sm:$0xff] }
  0x9f   : > { %1603 = vmatpush3.bf16.msra.mxu1 %v2116_v27  ;;  %v1592_v60 = vpack.c.bf16 %v2294_v33, %v2283_v35  ;;  %v1594_v61 = vpack.c.bf16 %v2327_v47, %v2302_v23  ;;  %v2661_v18 = vand.u32 4294901760, %v2334_v29 }
  0xa0   : > { %1579 = vmatpush3.bf16.msra.mxu0 %v1578_v63  ;;  %1605 = vmatprep.subr.bf16.mxu1 %v2130_v39 }
  0xa1   : > { %1581 = vmatprep.subr.bf16.mxu0 %v1580_v12 }
  0xa3   : > { %1607 = vmatpush3.bf16.msra.mxu1 %v2138_v45 }
  0xa4   : > { %1583 = vmatpush3.bf16.msra.mxu0 %v1582_v54  ;;  %1609 = vmatprep.subr.bf16.mxu1 %v2160_v62 }
  0xa5   : > { %1585 = vmatprep.subr.bf16.mxu0 %v1584_v1 }
  0xa7   : > { %1611 = vmatpush3.bf16.msra.mxu1 %v2176_v16 }
  0xa8   : > { %1587 = vmatpush3.bf16.msra.mxu0 %v1586_v17  ;;  %1613 = vmatprep.subr.bf16.mxu1 %v2191_v49 }
  0xa9   : > { %1589 = vmatprep.subr.bf16.mxu0 %v1588_v42 }
  0xab   : > { %1615 = vmatpush3.bf16.msra.mxu1 %v2206_v4 }
  0xac   : > { %1591 = vmatpush3.bf16.msra.mxu0 %v1590_v50  ;;  %1617 = vmatprep.subr.bf16.mxu1 %v2221_v48 }
  0xad   : > { %1593 = vmatprep.subr.bf16.mxu0 %v1592_v60 }
  0xaf   : > { %1619 = vmatpush3.bf16.msra.mxu1 %v2655_v5 }
  0xb0   : > { %1595 = vmatpush3.bf16.msra.mxu0 %v1594_v61  ;;  %1621 = vmatprep.subr.bf16.mxu1 %v2656_v30 }
  0xb1   : > { %1629 = vmatprep.subr.bf16.mxu0 %v1628_v0 }
  0xb3   : > { %767 = vmatmul.mubr.f32.vlgmr.msra.gmra.mrb[2].mxu0 %v2334_v29  ;;  %1623 = vmatpush3.bf16.msra.mxu1 %v2657_v53 }
  0xb4   : > { %1631 = vmatpush3.bf16.msra.mxu0 %v1630_v37  ;;  %1625 = vmatprep.subr.bf16.mxu1 %v2658_v51 }
  0xb5   : > { %1633 = vmatprep.subr.bf16.mxu0 %v1632_v41  ;;  %1041 = vmatprep.mubr.f32.mxu0 %v2659_v55 }
  0xb7   : > { %1627 = vmatpush3.bf16.msra.mxu1 %v2660_v56 }
  0xb8   : > { %1635 = vmatpush3.bf16.msra.mxu0 %v1634_v36  ;;  %1661 = vmatprep.subr.bf16.mxu1 %v2101_v14  ;;  %v2662_v14 = vand.u32 4294901760, %v2253_v10 }
  0xb9   : > { %1637 = vmatprep.subr.bf16.mxu0 %v1636_v7 }
  0xba   : > { %875 = vmatmul.mubr.f32.vlgmr.msra.gmra.mrb[2].mxu1 %v2661_v18 }
  0xbb   : > { %1663 = vmatpush3.bf16.msra.mxu1 %v2105_v20  ;;  %1145 = vmatprep.mubr.f32.mxu1 %v2659_v55  ;;  %v2663_v20 = vand.u32 4294901760, %v2262_v2 }
  0xbc   : > { %1639 = vmatpush3.bf16.msra.mxu0 %v1638_v3  ;;  %1665 = vmatprep.subr.bf16.mxu1 %v2109_v22  ;;  %v2664_v22 = vand.u32 4294901760, %v2283_v35 }
  0xbd   : > { %1641 = vmatprep.subr.bf16.mxu0 %v1640_v34  ;;  %v1652_v29 = vpack.c.bf16 %v2663_v20, %v2662_v14 }
  0xbf   : > { %1667 = vmatpush3.bf16.msra.mxu1 %v2116_v27  ;;  %v2665_v27 = vand.u32 4294901760, %v2294_v33 }
  0xc0   : > { %1643 = vmatpush3.bf16.msra.mxu0 %v1642_v8  ;;  %1669 = vmatprep.subr.bf16.mxu1 %v2130_v39 }
  0xc1   : > { %1645 = vmatprep.subr.bf16.mxu0 %v1644_v46  ;;  %v1656_v39 = vpack.c.bf16 %v2665_v27, %v2664_v22 }
  0xc3   : > { %1671 = vmatpush3.bf16.msra.mxu1 %v2138_v45  ;;  %v1658_v45 = vpack.c.bf16 %v510_v44, %v503_v57 }
  0xc4   : > { %1647 = vmatpush3.bf16.msra.mxu0 %v1646_v13  ;;  %1673 = vmatprep.subr.bf16.mxu1 %v2160_v62 }
  0xc5   : > { %1649 = vmatprep.subr.bf16.mxu0 %v1648_v59 }
  0xc7   : > { %1675 = vmatpush3.bf16.msra.mxu1 %v2176_v16  ;;  %v1284_v16 = vld [vmem:[%s2561_s2] ss:$0 sm:$0xff] }
  0xc8   : > { %1651 = vmatpush3.bf16.msra.mxu0 %v1650_v15  ;;  %1677 = vmatprep.subr.bf16.mxu1 %v2191_v49 }
  0xc9   : > { %1653 = vmatprep.subr.bf16.mxu0 %v1652_v29 }
  0xcb   : > { %1679 = vmatpush3.bf16.msra.mxu1 %v2206_v4 }
  0xcc   : > { %1655 = vmatpush3.bf16.msra.mxu0 %v2430_v26  ;;  %1681 = vmatprep.subr.bf16.mxu1 %v2221_v48 }
  0xcd   : > { %1657 = vmatprep.subr.bf16.mxu0 %v1656_v39 }
  0xcf   : > { %1683 = vmatpush3.bf16.msra.mxu1 %v2655_v5 }
  0xd0   : > { %1659 = vmatpush3.bf16.msra.mxu0 %v1658_v45  ;;  %1685 = vmatprep.subr.bf16.mxu1 %v2656_v30 }
  0xd3   : > { %1043 = vmatmul.mubr.f32.vlgmr.msra.gmra.mrb[4].mxu0 %v2323_v6  ;;  %1687 = vmatpush3.bf16.msra.mxu1 %v2657_v53 }
  0xd4   : > { %1689 = vmatprep.subr.bf16.mxu1 %v2658_v51 }
  0xd7   : > { %1691 = vmatpush3.bf16.msra.mxu1 %v2660_v56 }
  0xda   : > { %1147 = vmatmul.mubr.f32.vlgmr.msra.gmra.mrb[4].mxu1 %v2323_v6 }
 0x166   : > { %v1322_v35 = vpop.f32.mrb[0].mxu0 }
 0x167   : > { %v1323_v62 = vpop.f32.mrb[1].mxu0 }
 0x168   : > { %v1324_v10 = vadd.f32 %v1323_v62, %v1322_v35 }
 0x16a   : > { %v399_v49 = vadd.f32 %v1324_v10, %v1284_v16 }
 0x16d   : > { %v1357_v4 = vpop.f32.mrb[0].mxu1 }
 0x16e   : > { %v1358_v23 = vpop.f32.mrb[1].mxu1 }
 0x16f   : > { %v1359_v48 = vadd.f32 %v1358_v23, %v1357_v4 }
 0x171   : > { %v631_v2 = vadd.f32 %v1359_v48, %v399_v49 }
 0x186   : > { %v1392_v33 = vpop.f32.mrb[2].mxu0 }
 0x187   : > { %v1393_v57 = vpop.f32.mrb[3].mxu0 }
 0x188   : > { %v1394_v47 = vadd.f32 %v1393_v57, %v1392_v33 }
 0x18a   : > { %v769_v44 = vadd.f32 %v1394_v47, %v631_v2 }
 0x18d   : > { %v1427_v24 = vpop.f32.mrb[2].mxu1 }
 0x18e   : > { %v1428_v6 = vpop.f32.mrb[3].mxu1 }
 0x18f   : > { %v1429_v0 = vadd.f32 %v1428_v6, %v1427_v24 }
 0x191   : > { %v877_v37 = vadd.f32 %v1429_v0, %v769_v44 }
 0x1a6   : > { %v1462_v41 = vpop.f32.mrb[4].mxu0 }
 0x1a7   : > { %v1463_v36 = vpop.f32.mrb[5].mxu0 }
 0x1a8   : > { %v1464_v7 = vadd.f32 %v1463_v36, %v1462_v41 }
 0x1aa   : > { %v1045_v3 = vadd.f32 %v1464_v7, %v877_v37 }
 0x1ad   : > { %v1497_v34 = vpop.f32.mrb[4].mxu1 }
 0x1ae   : > { %v1498_v28 = vpop.f32.mrb[5].mxu1 }
 0x1af   : > { %v1499_v38 = vadd.f32 %v1498_v28, %v1497_v34 }
 0x1b1   : > { %v1149_v8 = vadd.f32 %v1499_v38, %v1045_v3 }
 0x1b3   : > { %1152 = vst [vmem:[%s233_s10] sm:$0xff] %v1149_v8 }
 0x1b4   : > { %1838 = shalt.err (!%p1835_p5)
}
 0x1b5   : > { %s1839_s19 = scalar_lea.hbm %s2510_s6, 128  ;;  %s1843_s4 = scalar_lea.hbm %s2562_s3, 256 }
 0x1b6   : > { %p1840_p9 = scmp.ne.s32.totalorder %s2510_s6, %s1839_s19  ;;  %p1844_p7 = scmp.lt.u32.totalorder %s2510_s6, %s2562_s3 }
 0x1b7   : > { %p1845_p3 = scmp.lt.u32.totalorder %s1843_s4, %s1839_s19  ;;  %p1847_p4 = scmp.lt.u32.totalorder %s1839_s19, %s2510_s6 }
 0x1b8   : > { %p1841_p1 = pnand %p1840_p9, %p2034_p10 }
 0x1b9   : > { %p1846_p13 = por %p1845_p3, %p1844_p7 }
 0x1ba   : > { %p1842_p2 = pneg %p1841_p1 }
 0x1bb   : > { %p1848_p6 = por %p1847_p4, %p1846_p13 }
 0x1bd   : > { %p1849_p8 = pnand %p1848_p6, %p1842_p2 }
 0x1bf   : > { %1852 = shalt.err (!%p1849_p8)
}
 0x1c0   : > { %1698 = dma.vmem_to_hbm [thread:$0]  (%p2034_p10), %s2512_s11, 128, %s2510_s6, %s1154_s26  }
 0x1c1 PF: > { %s1180_s24 = sand.u32 1, %s1891_s12   ;;  %p2666_p12 = scmp.ne.s32.totalorder %s2613_s23, 0 }
 0x1c2   : > { %p2667_p11 = scmp.ge.s32.totalorder %s1911_s17, 2  ;;  %s1181_s9 = scalar_lea.sflag [#allocation5], %s1180_s24 }
 0x1c4   : > { %p1709_p0 = pnand %p2667_p11, %p2666_p12 }
 0x1c6   : > { %1886 = dma.done.wait (!%p1709_p0), %s1181_s9, 128  }
 0x1c7   : > { %1888 = vsyncadd (!%p1709_p0), %s1181_s9, 4294967168  ;;  %s20_s17 = sadd.s32 1, %s1911_s17   ;;  %s2668_s12 = smov %s1895_s13 }
 0x1c8   : > { %p17_p5 = scmp.ge.s32.totalorder %s20_s17, 4   ;;  %s2669_s13 = smov %s1899_s14 }
 0x1c9   : > { %s2670_s14 = smov %s2043_s5  ;;  %s2671_s15 = smov %s1907_s16 }
 0x1ca   : > { %s2672_s16 = smov %s2674_s28  ;;  %19 = sbr.rel (!%p17_p5) target bundleno = 7 (0x7), region = 89 }
 0x1d1   :  { %1186 = vsyncpa [#allocation4], 1 }
 0x1d2   :  { %1188 = vsyncpa [#allocation4 + $0x1], 1 }
 0x1d3   :  { %1189 = vsyncpa [#allocation7], 1 }
 0x1d4   :  { %1190 = vsyncpa [#allocation5], 1 }
 0x1d5   :  { %1192 = vsyncpa [#allocation5 + $0x1], 1 }

</bundles_post_ra>
